<compile_context>
chip_gen: v7x
topology: tpu7x:2x2x1
jax: 0.10.0
libtpu: 0.0.40
codegen_flags: <defaults>
</compile_context>

<pallas_src>
import functools

import jax
import jax.numpy as jnp
from jax.experimental import pallas as pl
from jax.experimental.pallas import tpu as pltpu


def _round_up(x: int, m: int) -> int:
    return (x + m - 1) // m * m


def _make_block_kernel(nb_layers, ksize, Wp, L_acc, margin, activation,
                       negative_slope=0.01):
    """Fused (conv -> bias -> activation -> BN affine) x nb_layers kernel body."""
    KK = ksize * ksize

    def act(z):
        if activation == 0:                           # LeakyReLU (torch default slope 0.01)
            return jnp.where(z > 0, z, negative_slope * z)
        if activation == 1:                           # ReLU
            return jnp.maximum(z, 0.0)
        return z * jax.nn.sigmoid(z)                  # SiLU / swish

    def kernel(x_ref, mask_ref, *rest):
        canvas_ref = rest[-1]          # (Cout, Lin) bf16 VMEM scratch: next layer's input
        out_ref = rest[-2]             # (Cout, L_acc) f32 lane-dense output block
        layer_refs = rest[:-2]         # (w0, c0, w1, c1, ...)

        if nb_layers > 1:
            # Margins of the canvas must be zero ("same" padding); the interior is
            # fully overwritten every layer, so one zero-fill per grid step suffices.
            canvas_ref[...] = jnp.zeros(canvas_ref.shape, canvas_ref.dtype)

        for l in range(nb_layers):
            w_ref = layer_refs[2 * l]          # (K*K, Cout, Cin_l) bf16 tap matrices
            c_ref = layer_refs[2 * l + 1]      # (Cout, 3) f32: [bias, bn_scale, bn_shift]
            src_ref = x_ref if l == 0 else canvas_ref

            # Conv as a tap-wise reduction on the MXU:
            #   acc[co, h*Wp + w] = sum_{kh,kw,ci} w[co,ci,kh,kw] * x_pad[ci, h+kh, w+kw]
            acc = None
            for t in range(KK):
                off = (t // ksize) * Wp + (t % ksize)        # static lane offset
                contrib = jnp.dot(w_ref[t], src_ref[:, off:off + L_acc],
                                  preferred_element_type=jnp.float32)
                acc = contrib if acc is None else acc + contrib

            bias = c_ref[:, 0:1]                 # (Cout, 1) broadcasts over lanes
            scale = c_ref[:, 1:2]
            shift = c_ref[:, 2:3]
            z = acc + bias                       # conv bias (pre-activation)
            # TODO(synk): training-mode Dropout (stochastic mask) and BatchNorm
            # batch-statistic updates are not reproduced; eval-mode semantics only.
            y = act(z) * scale + shift           # Dropout==id, activation, BN affine (eval)

            if l < nb_layers - 1:
                # Re-pad for the next layer: zero the wrap/overrun columns and place
                # valid pixel (h, w) at canvas column (h+p)*Wp + (w+p).
                canvas_ref[:, margin:margin + L_acc] = (
                    (y * mask_ref[...]).astype(canvas_ref.dtype))
            else:
                out_ref[...] = y.astype(out_ref.dtype)       # unmasked lane-dense store

    return kernel


def convolution_block_forward(x_nchw, params, kernel_size=3, activation=0):
    """Forward pass of Convolution_Block (inference). Input/output NCHW float32."""
    if kernel_size % 2 != 1:
        # TODO(synk): even kernels need Conv2dSame's asymmetric (right/bottom) padding.
        raise NotImplementedError("only odd kernel_size (stride=1 Conv2dSame) is supported")
    N, Cin, H, W = x_nchw.shape
    K = kernel_size
    p = K // 2
    Hp, Wp = H + 2 * p, W + 2 * p
    nb_layers = len(params)
    Cout = params[0][0].shape[1]
    assert all(w.shape[1] == Cout for (w, _) in params)

    # Flattened-canvas geometry:
    #   input canvas column of pixel (h, w)  = (h + p) * Wp + (w + p)   (padding cols = 0)
    #   accumulator column of pixel (h, w)   =  h * Wp + w              (+ garbage cols)
    L_acc = _round_up(H * Wp, 128)                               # lane-dense accumulator
    Lin = _round_up(max(Hp * Wp, L_acc + (K - 1) * (Wp + 1)), 128)
    margin = p * Wp + p

    # Fail loudly instead of silently blowing past the scoped VMEM limit.
    # TODO(synk): spatial tiling with halo exchange for large images (budget must be
    # re-derived per generation: v7x has 64 MiB physical VMEM vs 128 MiB on v5e/v6e).
    per_step_bytes = 2 * (Cin * Lin * 2 + Cout * L_acc * 4) + Cout * Lin * 2
    if per_step_bytes > 12 * 1024 * 1024:
        raise NotImplementedError("per-sample working set too large; needs spatial tiling")

    # Build the bf16 input canvas: zero-pad spatially, flatten, pad to Lin columns.
    x_pad = jnp.pad(x_nchw, ((0, 0), (0, 0), (p, p), (p, p)))
    x_flat = x_pad.reshape(N, Cin, Hp * Wp)
    x_flat = jnp.pad(x_flat, ((0, 0), (0, 0), (0, Lin - Hp * Wp))).astype(jnp.bfloat16)

    # Valid-column mask of the top-left-convention accumulator (used to re-pad the
    # intermediate activation between layers).
    col = jnp.arange(L_acc, dtype=jnp.int32)
    mask = (((col % Wp) < W) & ((col // Wp) < H)).astype(jnp.float32).reshape(1, L_acc)

    in_specs = [
        pl.BlockSpec((pl.Squeezed(), Cin, Lin), lambda n: (n, 0, 0)),
        pl.BlockSpec((1, L_acc), lambda n: (0, 0)),
    ]
    inputs = [x_flat, mask]
    for (w_taps, cparams) in params:
        in_specs.append(pl.BlockSpec(w_taps.shape, lambda n: (0, 0, 0)))
        in_specs.append(pl.BlockSpec(cparams.shape, lambda n: (0, 0)))
        inputs.append(w_taps.astype(jnp.bfloat16))
        inputs.append(cparams.astype(jnp.float32))

    out_flat = pl.pallas_call(
        _make_block_kernel(nb_layers, K, Wp, L_acc, margin, activation),
        out_shape=jax.ShapeDtypeStruct((N, Cout, L_acc), jnp.float32),
        grid_spec=pltpu.PrefetchScalarGridSpec(
            num_scalar_prefetch=0,
            grid=(N,),                                    # one image per grid step
            in_specs=in_specs,
            out_specs=pl.BlockSpec((pl.Squeezed(), Cout, L_acc), lambda n: (n, 0, 0)),
            scratch_shapes=[pltpu.VMEM((Cout, Lin), jnp.bfloat16)],   # inter-layer canvas
        ),
        compiler_params=pltpu.CompilerParams(
            dimension_semantics=("parallel",),            # N=2 -> both v7x TensorCores
        ),
    )(*inputs)

    # Strip the padded-canvas bookkeeping columns -> NCHW.
    out = out_flat[:, :, :H * Wp].reshape(N, Cout, H, Wp)[:, :, :, :W]
    return out


def init_convolution_block_params(key, input_channels, output_channels,
                                  nb_layers=1, kernel_size=3, eps=1e-5):
    """Synthetic parameters mirroring the PyTorch module's __init__ (eval mode).

    Conv weights are generated in PyTorch's (Cout, Cin, kh, kw) layout and then
    permuted to the kernel's (K*K taps, Cout, Cin) layout, so real checkpoints
    can be dropped in with the same permutation.
    """
    K = kernel_size
    params = []
    cin = input_channels
    for _ in range(nb_layers):
        key, k_w, k_b, k_g, k_beta = jax.random.split(key, 5)
        w_oihw = 0.1 * jax.random.normal(k_w, (output_channels, cin, K, K), jnp.float32)
        bias = 0.1 * jax.random.normal(k_b, (output_channels,), jnp.float32)
        gamma = 1.0 + 0.1 * jax.random.normal(k_g, (output_channels,), jnp.float32)
        beta = 0.1 * jax.random.normal(k_beta, (output_channels,), jnp.float32)
        # BatchNorm2d eval mode with running_mean=0, running_var=1 folded to scale/shift.
        running_mean = jnp.zeros((output_channels,), jnp.float32)
        running_var = jnp.ones((output_channels,), jnp.float32)
        bn_scale = gamma / jnp.sqrt(running_var + eps)
        bn_shift = beta - running_mean * bn_scale
        # Tap layout: tap t = (kh, kw) = (t // K, t % K) -> (Cout, Cin) matrix.
        w_taps = jnp.transpose(w_oihw, (2, 3, 0, 1)).reshape(K * K, output_channels, cin)
        cparams = jnp.stack([bias, bn_scale, bn_shift], axis=1)       # (Cout, 3)
        params.append((w_taps, cparams))
        cin = output_channels
    return params


def _reference_forward(x_nchw, params, kernel_size=3, activation=0):
    """Pure-JAX f32 reference (lax conv) used for the correctness self-check."""
    K = kernel_size
    p = K // 2
    y = x_nchw
    for (w_taps, cparams) in params:
        co, ci = w_taps.shape[1], w_taps.shape[2]
        w_oihw = w_taps.reshape(K, K, co, ci).transpose(2, 3, 0, 1)
        z = jax.lax.conv_general_dilated(
            y, w_oihw, window_strides=(1, 1), padding=[(p, p), (p, p)],
            dimension_numbers=("NCHW", "OIHW", "NCHW"))
        z = z + cparams[:, 0].reshape(1, co, 1, 1)
        if activation == 0:
            a = jnp.where(z > 0, z, 0.01 * z)
        elif activation == 1:
            a = jnp.maximum(z, 0.0)
        else:
            a = z * jax.nn.sigmoid(z)
        y = a * cparams[:, 1].reshape(1, co, 1, 1) + cparams[:, 2].reshape(1, co, 1, 1)
    return y


if __name__ == "__main__":
    key = jax.random.PRNGKey(0)
    kx, kp = jax.random.split(key)

    # Convolution_Block(input_channels=4, output_channels=8, nb_layers=2,
    #                   kernel_size=3, stride=1, activation=0, dropout=0.05)
    N, Cin, H, W = 2, 4, 16, 16
    Cout, nb_layers, ksize, activation = 8, 2, 3, 0

    x = jax.random.normal(kx, (N, Cin, H, W), dtype=jnp.float32)
    params = init_convolution_block_params(kp, Cin, Cout, nb_layers, ksize)

    fwd = jax.jit(functools.partial(convolution_block_forward,
                                    kernel_size=ksize, activation=activation))
    out = fwd(x, params)
    jax.block_until_ready(out)

    assert out.shape == (N, Cout, H, W), out.shape
    assert out.dtype == jnp.float32

    # Correctness check against a pure-JAX f32 reference (loose tol: bf16 matmuls).
    ref = _reference_forward(x, params, ksize, activation)
    max_err = float(jnp.max(jnp.abs(out - ref)))
    assert max_err < 0.1, f"max abs error vs reference: {max_err}"
    print("KERNEL_OK")
</pallas_src>

<mosaic_0001>
module attributes {stable_mosaic.version = 11 : i64} {
  func.func @kernel(%arg0: i32, %arg1: memref<1x4x512xbf16, #tpu.memory_space<vmem>>, %arg2: memref<1x384xf32, #tpu.memory_space<vmem>>, %arg3: memref<9x8x4xbf16, #tpu.memory_space<vmem>>, %arg4: memref<8x3xf32, #tpu.memory_space<vmem>>, %arg5: memref<9x8x8xbf16, #tpu.memory_space<vmem>>, %arg6: memref<8x3xf32, #tpu.memory_space<vmem>>, %arg7: memref<1x8x384xf32, #tpu.memory_space<vmem>>, %arg8: memref<8x512xbf16, #tpu.memory_space<vmem>>) attributes {dimension_semantics = [#tpu.dimension_semantics<parallel>], iteration_bounds = array<i64: 2>, scalar_prefetch = 0 : i64, scratch_operands = 1 : i64, tpu.core_type = #tpu.core_type<tc>, window_params = [{transform_indices = @transform_0, window_bounds = array<i64: 1, 4, 512>}, {pipeline_mode = #tpu.pipeline_mode<synchronous>, transform_indices = @transform_1, window_bounds = array<i64: 1, 384>}, {pipeline_mode = #tpu.pipeline_mode<synchronous>, transform_indices = @transform_2, window_bounds = array<i64: 9, 8, 4>}, {pipeline_mode = #tpu.pipeline_mode<synchronous>, transform_indices = @transform_3, window_bounds = array<i64: 8, 3>}, {pipeline_mode = #tpu.pipeline_mode<synchronous>, transform_indices = @transform_4, window_bounds = array<i64: 9, 8, 8>}, {pipeline_mode = #tpu.pipeline_mode<synchronous>, transform_indices = @transform_5, window_bounds = array<i64: 8, 3>}, {transform_indices = @transform_6, window_bounds = array<i64: 1, 8, 384>}]} {
    %cst = arith.constant 0.000000e+00 : bf16
    %0 = vector.broadcast %cst : bf16 to vector<8x512xbf16>
    %c0 = arith.constant 0 : index
    %c0_0 = arith.constant 0 : index
    %1 = vector.load %arg8[%c0, %c0_0] : memref<8x512xbf16, #tpu.memory_space<vmem>>, vector<8x512xbf16>
    tpu.vector_store %arg8[%c0, %c0_0], %0 {strides = array<i32>} : memref<8x512xbf16, #tpu.memory_space<vmem>>, vector<8x512xbf16>,
    %c0_1 = arith.constant 0 : index
    %c0_2 = arith.constant 0 : index
    %c0_3 = arith.constant 0 : index
    %2 = vector.load %arg3[%c0_1, %c0_2, %c0_3] : memref<9x8x4xbf16, #tpu.memory_space<vmem>>, vector<1x8x4xbf16>
    %3 = vector.shape_cast %2 : vector<1x8x4xbf16> to vector<8x4xbf16>
    %c0_4 = arith.constant 0 : index
    %c0_5 = arith.constant 0 : index
    %c0_6 = arith.constant 0 : index
    %4 = vector.load %arg1[%c0_4, %c0_5, %c0_6] : memref<1x4x512xbf16, #tpu.memory_space<vmem>>, vector<1x4x384xbf16>
    %5 = vector.shape_cast %4 : vector<1x4x384xbf16> to vector<4x384xbf16>
    %cst_7 = arith.constant dense<0.000000e+00> : vector<8x384xf32>
    %6 = tpu.matmul %3, %5, %cst_7 {dimension_numbers = #tpu.dot_dimension_numbers<[1], [0], [0], [1], [0, 0, 1, 1], [], []>} : vector<8x4xbf16>, vector<4x384xbf16>, vector<8x384xf32> -> vector<8x384xf32>
    %c1 = arith.constant 1 : index
    %c0_8 = arith.constant 0 : index
    %c0_9 = arith.constant 0 : index
    %7 = vector.load %arg3[%c1, %c0_8, %c0_9] : memref<9x8x4xbf16, #tpu.memory_space<vmem>>, vector<1x8x4xbf16>
    %8 = vector.shape_cast %7 : vector<1x8x4xbf16> to vector<8x4xbf16>
    %c0_10 = arith.constant 0 : index
    %c0_11 = arith.constant 0 : index
    %c1_12 = arith.constant 1 : index
    %9 = vector.load %arg1[%c0_10, %c0_11, %c1_12] : memref<1x4x512xbf16, #tpu.memory_space<vmem>>, vector<1x4x384xbf16>
    %10 = vector.shape_cast %9 : vector<1x4x384xbf16> to vector<4x384xbf16>
    %cst_13 = arith.constant dense<0.000000e+00> : vector<8x384xf32>
    %11 = tpu.matmul %8, %10, %cst_13 {dimension_numbers = #tpu.dot_dimension_numbers<[1], [0], [0], [1], [0, 0, 1, 1], [], []>} : vector<8x4xbf16>, vector<4x384xbf16>, vector<8x384xf32> -> vector<8x384xf32>
    %12 = arith.addf %6, %11 : vector<8x384xf32>
    %c2 = arith.constant 2 : index
    %c0_14 = arith.constant 0 : index
    %c0_15 = arith.constant 0 : index
    %13 = vector.load %arg3[%c2, %c0_14, %c0_15] : memref<9x8x4xbf16, #tpu.memory_space<vmem>>, vector<1x8x4xbf16>
    %14 = vector.shape_cast %13 : vector<1x8x4xbf16> to vector<8x4xbf16>
    %c0_16 = arith.constant 0 : index
    %c0_17 = arith.constant 0 : index
    %c2_18 = arith.constant 2 : index
    %15 = vector.load %arg1[%c0_16, %c0_17, %c2_18] : memref<1x4x512xbf16, #tpu.memory_space<vmem>>, vector<1x4x384xbf16>
    %16 = vector.shape_cast %15 : vector<1x4x384xbf16> to vector<4x384xbf16>
    %cst_19 = arith.constant dense<0.000000e+00> : vector<8x384xf32>
    %17 = tpu.matmul %14, %16, %cst_19 {dimension_numbers = #tpu.dot_dimension_numbers<[1], [0], [0], [1], [0, 0, 1, 1], [], []>} : vector<8x4xbf16>, vector<4x384xbf16>, vector<8x384xf32> -> vector<8x384xf32>
    %18 = arith.addf %12, %17 : vector<8x384xf32>
    %c3 = arith.constant 3 : index
    %c0_20 = arith.constant 0 : index
    %c0_21 = arith.constant 0 : index
    %19 = vector.load %arg3[%c3, %c0_20, %c0_21] : memref<9x8x4xbf16, #tpu.memory_space<vmem>>, vector<1x8x4xbf16>
    %20 = vector.shape_cast %19 : vector<1x8x4xbf16> to vector<8x4xbf16>
    %c0_22 = arith.constant 0 : index
    %c0_23 = arith.constant 0 : index
    %c18 = arith.constant 18 : index
    %21 = vector.load %arg1[%c0_22, %c0_23, %c18] : memref<1x4x512xbf16, #tpu.memory_space<vmem>>, vector<1x4x384xbf16>
    %22 = vector.shape_cast %21 : vector<1x4x384xbf16> to vector<4x384xbf16>
    %cst_24 = arith.constant dense<0.000000e+00> : vector<8x384xf32>
    %23 = tpu.matmul %20, %22, %cst_24 {dimension_numbers = #tpu.dot_dimension_numbers<[1], [0], [0], [1], [0, 0, 1, 1], [], []>} : vector<8x4xbf16>, vector<4x384xbf16>, vector<8x384xf32> -> vector<8x384xf32>
    %24 = arith.addf %18, %23 : vector<8x384xf32>
    %c4 = arith.constant 4 : index
    %c0_25 = arith.constant 0 : index
    %c0_26 = arith.constant 0 : index
    %25 = vector.load %arg3[%c4, %c0_25, %c0_26] : memref<9x8x4xbf16, #tpu.memory_space<vmem>>, vector<1x8x4xbf16>
    %26 = vector.shape_cast %25 : vector<1x8x4xbf16> to vector<8x4xbf16>
    %c0_27 = arith.constant 0 : index
    %c0_28 = arith.constant 0 : index
    %c19 = arith.constant 19 : index
    %27 = vector.load %arg1[%c0_27, %c0_28, %c19] : memref<1x4x512xbf16, #tpu.memory_space<vmem>>, vector<1x4x384xbf16>
    %28 = vector.shape_cast %27 : vector<1x4x384xbf16> to vector<4x384xbf16>
    %cst_29 = arith.constant dense<0.000000e+00> : vector<8x384xf32>
    %29 = tpu.matmul %26, %28, %cst_29 {dimension_numbers = #tpu.dot_dimension_numbers<[1], [0], [0], [1], [0, 0, 1, 1], [], []>} : vector<8x4xbf16>, vector<4x384xbf16>, vector<8x384xf32> -> vector<8x384xf32>
    %30 = arith.addf %24, %29 : vector<8x384xf32>
    %c5 = arith.constant 5 : index
    %c0_30 = arith.constant 0 : index
    %c0_31 = arith.constant 0 : index
    %31 = vector.load %arg3[%c5, %c0_30, %c0_31] : memref<9x8x4xbf16, #tpu.memory_space<vmem>>, vector<1x8x4xbf16>
    %32 = vector.shape_cast %31 : vector<1x8x4xbf16> to vector<8x4xbf16>
    %c0_32 = arith.constant 0 : index
    %c0_33 = arith.constant 0 : index
    %c20 = arith.constant 20 : index
    %33 = vector.load %arg1[%c0_32, %c0_33, %c20] : memref<1x4x512xbf16, #tpu.memory_space<vmem>>, vector<1x4x384xbf16>
    %34 = vector.shape_cast %33 : vector<1x4x384xbf16> to vector<4x384xbf16>
    %cst_34 = arith.constant dense<0.000000e+00> : vector<8x384xf32>
    %35 = tpu.matmul %32, %34, %cst_34 {dimension_numbers = #tpu.dot_dimension_numbers<[1], [0], [0], [1], [0, 0, 1, 1], [], []>} : vector<8x4xbf16>, vector<4x384xbf16>, vector<8x384xf32> -> vector<8x384xf32>
    %36 = arith.addf %30, %35 : vector<8x384xf32>
    %c6 = arith.constant 6 : index
    %c0_35 = arith.constant 0 : index
    %c0_36 = arith.constant 0 : index
    %37 = vector.load %arg3[%c6, %c0_35, %c0_36] : memref<9x8x4xbf16, #tpu.memory_space<vmem>>, vector<1x8x4xbf16>
    %38 = vector.shape_cast %37 : vector<1x8x4xbf16> to vector<8x4xbf16>
    %c0_37 = arith.constant 0 : index
    %c0_38 = arith.constant 0 : index
    %c36 = arith.constant 36 : index
    %39 = vector.load %arg1[%c0_37, %c0_38, %c36] : memref<1x4x512xbf16, #tpu.memory_space<vmem>>, vector<1x4x384xbf16>
    %40 = vector.shape_cast %39 : vector<1x4x384xbf16> to vector<4x384xbf16>
    %cst_39 = arith.constant dense<0.000000e+00> : vector<8x384xf32>
    %41 = tpu.matmul %38, %40, %cst_39 {dimension_numbers = #tpu.dot_dimension_numbers<[1], [0], [0], [1], [0, 0, 1, 1], [], []>} : vector<8x4xbf16>, vector<4x384xbf16>, vector<8x384xf32> -> vector<8x384xf32>
    %42 = arith.addf %36, %41 : vector<8x384xf32>
    %c7 = arith.constant 7 : index
    %c0_40 = arith.constant 0 : index
    %c0_41 = arith.constant 0 : index
    %43 = vector.load %arg3[%c7, %c0_40, %c0_41] : memref<9x8x4xbf16, #tpu.memory_space<vmem>>, vector<1x8x4xbf16>
    %44 = vector.shape_cast %43 : vector<1x8x4xbf16> to vector<8x4xbf16>
    %c0_42 = arith.constant 0 : index
    %c0_43 = arith.constant 0 : index
    %c37 = arith.constant 37 : index
    %45 = vector.load %arg1[%c0_42, %c0_43, %c37] : memref<1x4x512xbf16, #tpu.memory_space<vmem>>, vector<1x4x384xbf16>
    %46 = vector.shape_cast %45 : vector<1x4x384xbf16> to vector<4x384xbf16>
    %cst_44 = arith.constant dense<0.000000e+00> : vector<8x384xf32>
    %47 = tpu.matmul %44, %46, %cst_44 {dimension_numbers = #tpu.dot_dimension_numbers<[1], [0], [0], [1], [0, 0, 1, 1], [], []>} : vector<8x4xbf16>, vector<4x384xbf16>, vector<8x384xf32> -> vector<8x384xf32>
    %48 = arith.addf %42, %47 : vector<8x384xf32>
    %c8 = arith.constant 8 : index
    %c0_45 = arith.constant 0 : index
    %c0_46 = arith.constant 0 : index
    %49 = vector.load %arg3[%c8, %c0_45, %c0_46] : memref<9x8x4xbf16, #tpu.memory_space<vmem>>, vector<1x8x4xbf16>
    %50 = vector.shape_cast %49 : vector<1x8x4xbf16> to vector<8x4xbf16>
    %c0_47 = arith.constant 0 : index
    %c0_48 = arith.constant 0 : index
    %c38 = arith.constant 38 : index
    %51 = vector.load %arg1[%c0_47, %c0_48, %c38] : memref<1x4x512xbf16, #tpu.memory_space<vmem>>, vector<1x4x384xbf16>
    %52 = vector.shape_cast %51 : vector<1x4x384xbf16> to vector<4x384xbf16>
    %cst_49 = arith.constant dense<0.000000e+00> : vector<8x384xf32>
    %53 = tpu.matmul %50, %52, %cst_49 {dimension_numbers = #tpu.dot_dimension_numbers<[1], [0], [0], [1], [0, 0, 1, 1], [], []>} : vector<8x4xbf16>, vector<4x384xbf16>, vector<8x384xf32> -> vector<8x384xf32>
    %54 = arith.addf %48, %53 : vector<8x384xf32>
    %c0_50 = arith.constant 0 : index
    %c0_51 = arith.constant 0 : index
    %55 = vector.load %arg4[%c0_50, %c0_51] : memref<8x3xf32, #tpu.memory_space<vmem>>, vector<8x1xf32>
    %c0_52 = arith.constant 0 : index
    %c1_53 = arith.constant 1 : index
    %56 = vector.load %arg4[%c0_52, %c1_53] : memref<8x3xf32, #tpu.memory_space<vmem>>, vector<8x1xf32>
    %c0_54 = arith.constant 0 : index
    %c2_55 = arith.constant 2 : index
    %57 = vector.load %arg4[%c0_54, %c2_55] : memref<8x3xf32, #tpu.memory_space<vmem>>, vector<8x1xf32>
    %58 = vector.broadcast %55 : vector<8x1xf32> to vector<8x384xf32>
    %59 = arith.addf %54, %58 : vector<8x384xf32>
    %cst_56 = arith.constant 0.000000e+00 : f32
    %60 = vector.broadcast %cst_56 : f32 to vector<8x384xf32>
    %61 = arith.cmpf ogt, %59, %60 : vector<8x384xf32>
    %cst_57 = arith.constant 0.00999999977 : f32
    %62 = vector.broadcast %cst_57 : f32 to vector<8x384xf32>
    %63 = arith.mulf %62, %59 : vector<8x384xf32>
    %64 = arith.select %61, %59, %63 : vector<8x384xi1>, vector<8x384xf32>
    %65 = vector.broadcast %56 : vector<8x1xf32> to vector<8x384xf32>
    %66 = arith.mulf %64, %65 : vector<8x384xf32>
    %67 = vector.broadcast %57 : vector<8x1xf32> to vector<8x384xf32>
    %68 = arith.addf %66, %67 : vector<8x384xf32>
    %c0_58 = arith.constant 0 : index
    %c0_59 = arith.constant 0 : index
    %69 = vector.load %arg2[%c0_58, %c0_59] : memref<1x384xf32, #tpu.memory_space<vmem>>, vector<1x384xf32>
    %70 = vector.broadcast %69 : vector<1x384xf32> to vector<8x384xf32>
    %71 = arith.mulf %68, %70 : vector<8x384xf32>
    %72 = arith.truncf %71 : vector<8x384xf32> to vector<8x384xbf16>
    %c0_60 = arith.constant 0 : index
    %c19_61 = arith.constant 19 : index
    %73 = vector.load %arg8[%c0_60, %c19_61] : memref<8x512xbf16, #tpu.memory_space<vmem>>, vector<8x384xbf16>
    tpu.vector_store %arg8[%c0_60, %c19_61], %72 {strides = array<i32>} : memref<8x512xbf16, #tpu.memory_space<vmem>>, vector<8x384xbf16>,
    %c0_62 = arith.constant 0 : index
    %c0_63 = arith.constant 0 : index
    %c0_64 = arith.constant 0 : index
    %74 = vector.load %arg5[%c0_62, %c0_63, %c0_64] : memref<9x8x8xbf16, #tpu.memory_space<vmem>>, vector<1x8x8xbf16>
    %75 = vector.shape_cast %74 : vector<1x8x8xbf16> to vector<8x8xbf16>
    %c0_65 = arith.constant 0 : index
    %c0_66 = arith.constant 0 : index
    %76 = vector.load %arg8[%c0_65, %c0_66] : memref<8x512xbf16, #tpu.memory_space<vmem>>, vector<8x384xbf16>
    %cst_67 = arith.constant dense<0.000000e+00> : vector<8x384xf32>
    %77 = tpu.matmul %75, %76, %cst_67 {dimension_numbers = #tpu.dot_dimension_numbers<[1], [0], [0], [1], [0, 0, 1, 1], [], []>} : vector<8x8xbf16>, vector<8x384xbf16>, vector<8x384xf32> -> vector<8x384xf32>
    %c1_68 = arith.constant 1 : index
    %c0_69 = arith.constant 0 : index
    %c0_70 = arith.constant 0 : index
    %78 = vector.load %arg5[%c1_68, %c0_69, %c0_70] : memref<9x8x8xbf16, #tpu.memory_space<vmem>>, vector<1x8x8xbf16>
    %79 = vector.shape_cast %78 : vector<1x8x8xbf16> to vector<8x8xbf16>
    %c0_71 = arith.constant 0 : index
    %c1_72 = arith.constant 1 : index
    %80 = vector.load %arg8[%c0_71, %c1_72] : memref<8x512xbf16, #tpu.memory_space<vmem>>, vector<8x384xbf16>
    %cst_73 = arith.constant dense<0.000000e+00> : vector<8x384xf32>
    %81 = tpu.matmul %79, %80, %cst_73 {dimension_numbers = #tpu.dot_dimension_numbers<[1], [0], [0], [1], [0, 0, 1, 1], [], []>} : vector<8x8xbf16>, vector<8x384xbf16>, vector<8x384xf32> -> vector<8x384xf32>
    %82 = arith.addf %77, %81 : vector<8x384xf32>
    %c2_74 = arith.constant 2 : index
    %c0_75 = arith.constant 0 : index
    %c0_76 = arith.constant 0 : index
    %83 = vector.load %arg5[%c2_74, %c0_75, %c0_76] : memref<9x8x8xbf16, #tpu.memory_space<vmem>>, vector<1x8x8xbf16>
    %84 = vector.shape_cast %83 : vector<1x8x8xbf16> to vector<8x8xbf16>
    %c0_77 = arith.constant 0 : index
    %c2_78 = arith.constant 2 : index
    %85 = vector.load %arg8[%c0_77, %c2_78] : memref<8x512xbf16, #tpu.memory_space<vmem>>, vector<8x384xbf16>
    %cst_79 = arith.constant dense<0.000000e+00> : vector<8x384xf32>
    %86 = tpu.matmul %84, %85, %cst_79 {dimension_numbers = #tpu.dot_dimension_numbers<[1], [0], [0], [1], [0, 0, 1, 1], [], []>} : vector<8x8xbf16>, vector<8x384xbf16>, vector<8x384xf32> -> vector<8x384xf32>
    %87 = arith.addf %82, %86 : vector<8x384xf32>
    %c3_80 = arith.constant 3 : index
    %c0_81 = arith.constant 0 : index
    %c0_82 = arith.constant 0 : index
    %88 = vector.load %arg5[%c3_80, %c0_81, %c0_82] : memref<9x8x8xbf16, #tpu.memory_space<vmem>>, vector<1x8x8xbf16>
    %89 = vector.shape_cast %88 : vector<1x8x8xbf16> to vector<8x8xbf16>
    %c0_83 = arith.constant 0 : index
    %c18_84 = arith.constant 18 : index
    %90 = vector.load %arg8[%c0_83, %c18_84] : memref<8x512xbf16, #tpu.memory_space<vmem>>, vector<8x384xbf16>
    %cst_85 = arith.constant dense<0.000000e+00> : vector<8x384xf32>
    %91 = tpu.matmul %89, %90, %cst_85 {dimension_numbers = #tpu.dot_dimension_numbers<[1], [0], [0], [1], [0, 0, 1, 1], [], []>} : vector<8x8xbf16>, vector<8x384xbf16>, vector<8x384xf32> -> vector<8x384xf32>
    %92 = arith.addf %87, %91 : vector<8x384xf32>
    %c4_86 = arith.constant 4 : index
    %c0_87 = arith.constant 0 : index
    %c0_88 = arith.constant 0 : index
    %93 = vector.load %arg5[%c4_86, %c0_87, %c0_88] : memref<9x8x8xbf16, #tpu.memory_space<vmem>>, vector<1x8x8xbf16>
    %94 = vector.shape_cast %93 : vector<1x8x8xbf16> to vector<8x8xbf16>
    %c0_89 = arith.constant 0 : index
    %c19_90 = arith.constant 19 : index
    %95 = vector.load %arg8[%c0_89, %c19_90] : memref<8x512xbf16, #tpu.memory_space<vmem>>, vector<8x384xbf16>
    %cst_91 = arith.constant dense<0.000000e+00> : vector<8x384xf32>
    %96 = tpu.matmul %94, %95, %cst_91 {dimension_numbers = #tpu.dot_dimension_numbers<[1], [0], [0], [1], [0, 0, 1, 1], [], []>} : vector<8x8xbf16>, vector<8x384xbf16>, vector<8x384xf32> -> vector<8x384xf32>
    %97 = arith.addf %92, %96 : vector<8x384xf32>
    %c5_92 = arith.constant 5 : index
    %c0_93 = arith.constant 0 : index
    %c0_94 = arith.constant 0 : index
    %98 = vector.load %arg5[%c5_92, %c0_93, %c0_94] : memref<9x8x8xbf16, #tpu.memory_space<vmem>>, vector<1x8x8xbf16>
    %99 = vector.shape_cast %98 : vector<1x8x8xbf16> to vector<8x8xbf16>
    %c0_95 = arith.constant 0 : index
    %c20_96 = arith.constant 20 : index
    %100 = vector.load %arg8[%c0_95, %c20_96] : memref<8x512xbf16, #tpu.memory_space<vmem>>, vector<8x384xbf16>
    %cst_97 = arith.constant dense<0.000000e+00> : vector<8x384xf32>
    %101 = tpu.matmul %99, %100, %cst_97 {dimension_numbers = #tpu.dot_dimension_numbers<[1], [0], [0], [1], [0, 0, 1, 1], [], []>} : vector<8x8xbf16>, vector<8x384xbf16>, vector<8x384xf32> -> vector<8x384xf32>
    %102 = arith.addf %97, %101 : vector<8x384xf32>
    %c6_98 = arith.constant 6 : index
    %c0_99 = arith.constant 0 : index
    %c0_100 = arith.constant 0 : index
    %103 = vector.load %arg5[%c6_98, %c0_99, %c0_100] : memref<9x8x8xbf16, #tpu.memory_space<vmem>>, vector<1x8x8xbf16>
    %104 = vector.shape_cast %103 : vector<1x8x8xbf16> to vector<8x8xbf16>
    %c0_101 = arith.constant 0 : index
    %c36_102 = arith.constant 36 : index
    %105 = vector.load %arg8[%c0_101, %c36_102] : memref<8x512xbf16, #tpu.memory_space<vmem>>, vector<8x384xbf16>
    %cst_103 = arith.constant dense<0.000000e+00> : vector<8x384xf32>
    %106 = tpu.matmul %104, %105, %cst_103 {dimension_numbers = #tpu.dot_dimension_numbers<[1], [0], [0], [1], [0, 0, 1, 1], [], []>} : vector<8x8xbf16>, vector<8x384xbf16>, vector<8x384xf32> -> vector<8x384xf32>
    %107 = arith.addf %102, %106 : vector<8x384xf32>
    %c7_104 = arith.constant 7 : index
    %c0_105 = arith.constant 0 : index
    %c0_106 = arith.constant 0 : index
    %108 = vector.load %arg5[%c7_104, %c0_105, %c0_106] : memref<9x8x8xbf16, #tpu.memory_space<vmem>>, vector<1x8x8xbf16>
    %109 = vector.shape_cast %108 : vector<1x8x8xbf16> to vector<8x8xbf16>
    %c0_107 = arith.constant 0 : index
    %c37_108 = arith.constant 37 : index
    %110 = vector.load %arg8[%c0_107, %c37_108] : memref<8x512xbf16, #tpu.memory_space<vmem>>, vector<8x384xbf16>
    %cst_109 = arith.constant dense<0.000000e+00> : vector<8x384xf32>
    %111 = tpu.matmul %109, %110, %cst_109 {dimension_numbers = #tpu.dot_dimension_numbers<[1], [0], [0], [1], [0, 0, 1, 1], [], []>} : vector<8x8xbf16>, vector<8x384xbf16>, vector<8x384xf32> -> vector<8x384xf32>
    %112 = arith.addf %107, %111 : vector<8x384xf32>
    %c8_110 = arith.constant 8 : index
    %c0_111 = arith.constant 0 : index
    %c0_112 = arith.constant 0 : index
    %113 = vector.load %arg5[%c8_110, %c0_111, %c0_112] : memref<9x8x8xbf16, #tpu.memory_space<vmem>>, vector<1x8x8xbf16>
    %114 = vector.shape_cast %113 : vector<1x8x8xbf16> to vector<8x8xbf16>
    %c0_113 = arith.constant 0 : index
    %c38_114 = arith.constant 38 : index
    %115 = vector.load %arg8[%c0_113, %c38_114] : memref<8x512xbf16, #tpu.memory_space<vmem>>, vector<8x384xbf16>
    %cst_115 = arith.constant dense<0.000000e+00> : vector<8x384xf32>
    %116 = tpu.matmul %114, %115, %cst_115 {dimension_numbers = #tpu.dot_dimension_numbers<[1], [0], [0], [1], [0, 0, 1, 1], [], []>} : vector<8x8xbf16>, vector<8x384xbf16>, vector<8x384xf32> -> vector<8x384xf32>
    %117 = arith.addf %112, %116 : vector<8x384xf32>
    %c0_116 = arith.constant 0 : index
    %c0_117 = arith.constant 0 : index
    %118 = vector.load %arg6[%c0_116, %c0_117] : memref<8x3xf32, #tpu.memory_space<vmem>>, vector<8x1xf32>
    %c0_118 = arith.constant 0 : index
    %c1_119 = arith.constant 1 : index
    %119 = vector.load %arg6[%c0_118, %c1_119] : memref<8x3xf32, #tpu.memory_space<vmem>>, vector<8x1xf32>
    %c0_120 = arith.constant 0 : index
    %c2_121 = arith.constant 2 : index
    %120 = vector.load %arg6[%c0_120, %c2_121] : memref<8x3xf32, #tpu.memory_space<vmem>>, vector<8x1xf32>
    %121 = vector.broadcast %118 : vector<8x1xf32> to vector<8x384xf32>
    %122 = arith.addf %117, %121 : vector<8x384xf32>
    %cst_122 = arith.constant 0.000000e+00 : f32
    %123 = vector.broadcast %cst_122 : f32 to vector<8x384xf32>
    %124 = arith.cmpf ogt, %122, %123 : vector<8x384xf32>
    %cst_123 = arith.constant 0.00999999977 : f32
    %125 = vector.broadcast %cst_123 : f32 to vector<8x384xf32>
    %126 = arith.mulf %125, %122 : vector<8x384xf32>
    %127 = arith.select %124, %122, %126 : vector<8x384xi1>, vector<8x384xf32>
    %128 = vector.broadcast %119 : vector<8x1xf32> to vector<8x384xf32>
    %129 = arith.mulf %127, %128 : vector<8x384xf32>
    %130 = vector.broadcast %120 : vector<8x1xf32> to vector<8x384xf32>
    %131 = arith.addf %129, %130 : vector<8x384xf32>
    %c0_124 = arith.constant 0 : index
    %c0_125 = arith.constant 0 : index
    %c0_126 = arith.constant 0 : index
    %132 = vector.load %arg7[%c0_124, %c0_125, %c0_126] : memref<1x8x384xf32, #tpu.memory_space<vmem>>, vector<1x8x384xf32>
    %133 = vector.shape_cast %132 : vector<1x8x384xf32> to vector<8x384xf32>
    %134 = vector.shape_cast %131 : vector<8x384xf32> to vector<1x8x384xf32>
    tpu.vector_store %arg7[%c0_124, %c0_125, %c0_126], %134 {strides = array<i32>} : memref<1x8x384xf32, #tpu.memory_space<vmem>>, vector<1x8x384xf32>,
    return
  }
  func.func @transform_0(%arg0: i32) -> (i32, i32, i32) {
    %c0_i32 = arith.constant 0 : i32
    %c0_i32_0 = arith.constant 0 : i32
    %c0_i32_1 = arith.constant 0 : i32
    return %arg0, %c0_i32, %c0_i32_0 : i32, i32, i32
  }
  func.func @transform_1(%arg0: i32) -> (i32, i32) {
    %c0_i32 = arith.constant 0 : i32
    %c0_i32_0 = arith.constant 0 : i32
    %c0_i32_1 = arith.constant 0 : i32
    return %c0_i32, %c0_i32_0 : i32, i32
  }
  func.func @transform_2(%arg0: i32) -> (i32, i32, i32) {
    %c0_i32 = arith.constant 0 : i32
    %c0_i32_0 = arith.constant 0 : i32
    %c0_i32_1 = arith.constant 0 : i32
    %c0_i32_2 = arith.constant 0 : i32
    return %c0_i32, %c0_i32_0, %c0_i32_1 : i32, i32, i32
  }
  func.func @transform_3(%arg0: i32) -> (i32, i32) {
    %c0_i32 = arith.constant 0 : i32
    %c0_i32_0 = arith.constant 0 : i32
    %c0_i32_1 = arith.constant 0 : i32
    return %c0_i32, %c0_i32_0 : i32, i32
  }
  func.func @transform_4(%arg0: i32) -> (i32, i32, i32) {
    %c0_i32 = arith.constant 0 : i32
    %c0_i32_0 = arith.constant 0 : i32
    %c0_i32_1 = arith.constant 0 : i32
    %c0_i32_2 = arith.constant 0 : i32
    return %c0_i32, %c0_i32_0, %c0_i32_1 : i32, i32, i32
  }
  func.func @transform_5(%arg0: i32) -> (i32, i32) {
    %c0_i32 = arith.constant 0 : i32
    %c0_i32_0 = arith.constant 0 : i32
    %c0_i32_1 = arith.constant 0 : i32
    return %c0_i32, %c0_i32_0 : i32, i32
  }
  func.func @transform_6(%arg0: i32) -> (i32, i32, i32) {
    %c0_i32 = arith.constant 0 : i32
    %c0_i32_0 = arith.constant 0 : i32
    %c0_i32_1 = arith.constant 0 : i32
    return %arg0, %c0_i32, %c0_i32_0 : i32, i32, i32
  }
}

</mosaic_0001>

<bundles_post_ra>
// kernel: convolution_block_forward.1
= control target key start
LH: loop header
LB: loop body
LE: loop exit
PB: predicated region body
PF: predicated region fallthrough
CT: control target
= control target key end

     0   :  { %s2888_s21 = smov 0   ;;  %s3278_s0 = inlined_call_operand.vmem [shape: bf16[2,4,512], index: 0, kind: input, shape index: {}]   ;;  %s3279_s1 = inlined_call_operand.vmem [shape: f32[1,384], index: 1, kind: input, shape index: {}]   ;;  %s3280_s2 = inlined_call_operand.vmem [shape: bf16[9,8,4], index: 2, kind: input, shape index: {}]   ;;  %s3281_s3 = inlined_call_operand.vmem [shape: f32[8,3], index: 3, kind: input, shape index: {}]   ;;  %s3282_s4 = inlined_call_operand.vmem [shape: bf16[9,8,8], index: 4, kind: input, shape index: {}]   ;;  %s3283_s5 = inlined_call_operand.vmem [shape: f32[8,3], index: 5, kind: input, shape index: {}]   ;;  %s3284_s6 = inlined_call_operand.vmem [shape: f32[2,8,384], index: 6, kind: output, shape index: {}]  }
   0x1 LB: > { %s2558_s22 = sadd.s32 4294967295, %s2836_s21   ;;  %p2562_p0 = scmp.ge.s32.totalorder %s2836_s21, 1  ;;  %s2836_s21 = sphi %s2888_s21, %s16_s21  }
   0x2   : > { %p212_p1 = scmp.lt.s32.totalorder %s2836_s21, 3 }
   0x4   : > { %p213_p2 = pnand %p2562_p0, %p212_p1 }
   0x5   : > { %p242_p3 = scmp.lt.s32.totalorder (!%p213_p2), %s2558_s22, 1  ;;  %v265_v0 = vlaneseq (!%p213_p2)  ;;  %v2838_v1 = vmov (!%p213_p2), 1983009808   ;;  %v2839_v5 = vmov (!%p213_p2), 0.0   ;;  %v2840_v6 = vmov (!%p213_p2), 0   ;;  %s2842_s27 = smov (!%p213_p2), 127  }
   0x6   : > { %216 = sbr.rel (%p213_p2) target bundleno = 976 (0x3d0), region = 44  ;;  %v263_v2 = vunpack.c.l.s4 (!%p213_p2), %v2838_v1  ;;  %2686 = vmatprep.subr.bf16.mxu1 (!%p213_p2), %v2839_v5  ;;  %336 = vmatprep.mubr.bf16.mxu0 (!%p213_p2), %v2840_v6  ;;  %253 = vst [vmem:[#allocation2] sm:$0xff] (!%p213_p2), %v2840_v6  ;;  %254 = vst [vmem:[#allocation2 + $0x8] sm:$0xff] (!%p213_p2), %v2840_v6  ;;  %vm2841_vm0 = vmmov (!%p213_p2), 0   ;;  %s2843_s28 = smov (!%p213_p2), 126   ;;  %v1398_v18 = vld [vmem:[%s3281_s3] sm:$0xff] (!%p213_p2) }
   0x7   : > { %v2898_v3 = vshrl.u32 (!%p213_p2), %v265_v0, 7  ;;  %2818 = vset.pattern.permute.xlu0 (!%p213_p2), %v2840_v6  ;;  %2688 = vmatprep.mubr.msk.bf16.mxu1 (!%p213_p2), %vm2841_vm0, %v2839_v5  ;;  %s2844_s29 = smov (!%p213_p2), 110   ;;  %s2845_s30 = smov (!%p213_p2), 109   ;;  %v2850_v19 = vmov (!%p213_p2), 1   ;;  %v2851_v20 = vmov (!%p213_p2), 2   ;;  %vm286_vm1 = vcmask (!%p213_p2), 1039360  }
   0x8   : > { %v264_v4 = vunpack.c.0.s8 (!%p213_p2), %v263_v2  ;;  %s2846_s7 = smov (!%p213_p2), 108   ;;  %s2847_s8 = smov (!%p213_p2), 92   ;;  %2819 = vset.pattern.permute.xlu1 (!%p213_p2), %v2850_v19  ;;  %vm294_vm2 = vcmask (!%p213_p2), 1041408   ;;  %v2566_v30 = vld [vmem:[%s3280_s2 + $0x4] sm:$0xf] (!%p213_p2)  ;;  %vm290_vm3 = vcmask (!%p213_p2), 31744  }
   0x9   : > { %s2848_s9 = smov (!%p213_p2), 91   ;;  %s2849_s10 = smov (!%p213_p2), 90   ;;  %vm524_vm4 = vcmask (!%p213_p2), 1031168   ;;  %v255_v40 = vld [vmem:[%s3280_s2] sm:$0xf] (!%p213_p2)  ;;  %vm653_vm5 = vcmask (!%p213_p2), 900096  }
   0xa   : > { %v267_v7 = vsub.s32 (!%p213_p2), %v264_v4, %v2898_v3  ;;  %v2573_v50 = vld [vmem:[%s3280_s2 + $0x8] sm:$0xf] (!%p213_p2)  ;;  %vm782_vm6 = vcmask (!%p213_p2), 891904   ;;  %v2577_v60 = vld [vmem:[%s3280_s2 + $0xc] sm:$0xf] (!%p213_p2)  ;;  %vm911_vm7 = vcmask (!%p213_p2), 883712  }
   0xb   : > { %vm1040_vm8 = vcmask (!%p213_p2), 752640   ;;  %vm1169_vm9 = vcmask (!%p213_p2), 744448   ;;  %vm1298_vm10 = vcmask (!%p213_p2), 736256   ;;  %s2852_s19 = smov (!%p213_p2), 19   ;;  %vm1474_vm14 = vcmask (!%p213_p2), 1043608  }
   0xc   : > { %vm1475_vm15 = vcmask (!%p213_p2), 1047556  }
   0xd   : > { %s3286_s22 = smov (!%p242_p3, %s2558_s22), 1 }
   0xe   : > { %s2647_s23 = sshll.u32 %s3286_s22, 3  ;;  %s2794_s18 = smul.u32 24, %s3286_s22 }
   0xf   : > { %s246_s26 = scalar_lea.vmem %s3278_s0, %s2647_s23 }
  0x10   : > { %v259_v8 = vld [vmem:[%s246_s26] sm:$0xff] }
  0x11   : > { %v256_v9 = vld [vmem:[%s246_s26] sm:$0x3f]  ;;  %v268_v10 = vrot.slane %v259_v8, %v267_v7  ;;  %v261_v11 = vcombine.high %v259_v8, %v259_v8 }
  0x12   : > { %v2912_v12 = vrot.slane %v256_v9, %v267_v7  ;;  %v386_v13 = vcombine.high %v256_v9, %v256_v9  ;;  %v2581_v9 = vld [vmem:[%s3280_s2 + $0x10] sm:$0xf] }
  0x13   : > { %278 = vrot.lane.b32.xlu0 %v268_v10, %s2842_s27  ;;  %v276_v14 = vcombine.high %v268_v10, %v268_v10  ;;  %v275_v15 = vrot.slane %v261_v11, %v267_v7 }
  0x14   : > { %v2915_v16 = vrot.slane %v386_v13, %v267_v7  ;;  %v401_v24 = vcombine.high %v2912_v12, %v2912_v12  ;;  %v406_v33 = vsel %vm294_vm2, %v2912_v12, 0 }
  0x15   : > { %282 = vrot.lane.b32.xlu1 %v275_v15, %s2842_s27  ;;  %v277_v17 = vcombine.high %v275_v15, %v275_v15 }
  0x16   : > { %v412_v35 = vsel %vm294_vm2, %v2915_v16, 0 }
  0x17   : > { %280 = vrot.lane.b32.xlu0 %v276_v14, %s2842_s27 }
  0x19   : > { %284 = vrot.lane.b32.xlu1 %v277_v17, %s2842_s27 }
  0x1b   : > { %516 = vrot.lane.b32.xlu0 %v268_v10, %s2843_s28 }
  0x1d   : > { %518 = vrot.lane.b32.xlu1 %v276_v14, %s2843_s28 }
  0x1f   : > { %520 = vrot.lane.b32.xlu0 %v275_v15, %s2843_s28 }
  0x21   : > { %522 = vrot.lane.b32.xlu1 %v277_v17, %s2843_s28 }
  0x23   : > { %645 = vrot.lane.b32.xlu0 %v268_v10, %s2844_s29 }
  0x25   : > { %647 = vrot.lane.b32.xlu1 %v276_v14, %s2844_s29 }
  0x27   : > { %649 = vrot.lane.b32.xlu0 %v275_v15, %s2844_s29 }
  0x29   : > { %651 = vrot.lane.b32.xlu1 %v277_v17, %s2844_s29 }
  0x2b   : > { %774 = vrot.lane.b32.xlu0 %v268_v10, %s2845_s30 }
  0x2d   : > { %776 = vrot.lane.b32.xlu1 %v276_v14, %s2845_s30 }
  0x2f   : > { %778 = vrot.lane.b32.xlu0 %v275_v15, %s2845_s30 }
  0x31   : > { %780 = vrot.lane.b32.xlu1 %v277_v17, %s2845_s30 }
  0x33   : > { %903 = vrot.lane.b32.xlu0 %v268_v10, %s2846_s7 }
  0x35   : > { %905 = vrot.lane.b32.xlu1 %v276_v14, %s2846_s7 }
  0x37   : > { %907 = vrot.lane.b32.xlu0 %v275_v15, %s2846_s7 }
  0x39   : > { %909 = vrot.lane.b32.xlu1 %v277_v17, %s2846_s7 }
  0x3b   : > { %1032 = vrot.lane.b32.xlu0 %v268_v10, %s2847_s8 }
  0x3d   : > { %1034 = vrot.lane.b32.xlu1 %v276_v14, %s2847_s8 }
  0x3f   : > { %1036 = vrot.lane.b32.xlu0 %v275_v15, %s2847_s8 }
  0x41   : > { %1038 = vrot.lane.b32.xlu1 %v277_v17, %s2847_s8 }
  0x43   : > { %1161 = vrot.lane.b32.xlu0 %v268_v10, %s2848_s9 }
  0x45   : > { %1163 = vrot.lane.b32.xlu1 %v276_v14, %s2848_s9 }
  0x47   : > { %1165 = vrot.lane.b32.xlu0 %v275_v15, %s2848_s9 }
  0x49   : > { %1167 = vrot.lane.b32.xlu1 %v277_v17, %s2848_s9 }
  0x4b   : > { %1290 = vrot.lane.b32.xlu0 %v268_v10, %s2849_s10 }
  0x4d   : > { %1292 = vrot.lane.b32.xlu1 %v276_v14, %s2849_s10 }
  0x4f   : > { %1294 = vrot.lane.b32.xlu0 %v275_v15, %s2849_s10 }
  0x51   : > { %1296 = vrot.lane.b32.xlu1 %v277_v17, %s2849_s10 }
  0x53   : > { %1401 = vperm.xlu0 %2818, %v1398_v18  }
  0x55   : > { %1417 = vperm.xlu1 %2819, %v1398_v18  }
  0x59   : > { %2820 = vset.pattern.permute.xlu1 %v2851_v20 }
  0x5a   : > { %1424 = vperm.xlu1 %2820, %v1398_v18  }
  0x5e   : > { %2821 = vset.pattern.permute.xlu1 %v2850_v19  ;;  %v2585_v19 = vld [vmem:[%s3280_s2 + $0x14] sm:$0xf] }
  0x85   : > { %v279_v21 = vpop.permute.xlu0 %278 }
  0x87   : > { %v283_v22 = vpop.permute.xlu1 %282 }
  0x89   : > { %v281_v23 = vpop.permute.xlu0 %280 }
  0x8a   : > { %v288_v25 = vsel %vm286_vm1, %v281_v23, %v283_v22  ;;  %v287_v26 = vsel %vm286_vm1, %v279_v21, %v281_v23 }
  0x8b   : > { %2567 = vmatprep.subr.msk.bf16.mxu0 %vm294_vm2, %v288_v25  ;;  %v285_v27 = vpop.permute.xlu1 %284  ;;  %v296_v28 = vsel %vm294_vm2, %v287_v26, 0 }
  0x8c   : > { %305 = vmatpush1.bf16.msra.mxu0 %v296_v28  ;;  %v289_v29 = vsel %vm286_vm1, %v283_v22, %v285_v27 }
  0x8d   : > { %v302_v31 = vsel %vm294_vm2, %v289_v29, 0  ;;  %v517_v32 = vpop.permute.xlu0 %516  ;;  %2570 = vmatprep.subr.msk.bf16.mxu0 %vm294_vm2, %v401_v24 }
  0x8e   : > { %2687 = vmatpush3.bf16.msra.mxu1 %v302_v31 }
  0x8f   : > { %2568 = vmatmul.mubr.msk.bf16.vlgmr.msra.gmra.mrb[0].mxu0 %vm290_vm3, %v2566_v30  ;;  %2692 = vmatprep.subr.bf16.mxu1 %v2839_v5  ;;  %v519_v34 = vpop.permute.xlu1 %518 }
  0x90   : > { %415 = vmatpush1.bf16.msra.mxu0 %v406_v33  ;;  %446 = vmatprep.mubr.bf16.mxu0 %v2840_v6  ;;  %v525_v37 = vsel %vm524_vm4, %v517_v32, %v519_v34 }
  0x91   : > { %2689 = vmatmul.mubr.msk.bf16.vlgmr.msra.gmra.mrb[0].mxu1 %vm290_vm3, %v2566_v30  ;;  %v521_v36 = vpop.permute.xlu0 %520  ;;  %v532_v42 = vsel %vm294_vm2, %v525_v37, 0  ;;  %v2589_v30 = vld [vmem:[%s3280_s2 + $0x18] sm:$0xf] }
  0x92   : > { %v526_v38 = vsel %vm524_vm4, %v519_v34, %v521_v36  ;;  %2693 = vmatpush3.bf16.msra.mxu1 %v412_v35  ;;  %2694 = vmatprep.mubr.msk.bf16.mxu1 %vm2841_vm0, %v2839_v5 }
  0x93   : > { %2574 = vmatprep.subr.msk.bf16.mxu0 %vm294_vm2, %v526_v38  ;;  %v523_v39 = vpop.permute.xlu1 %522  ;;  %2698 = vmatprep.subr.bf16.mxu1 %v2839_v5 }
  0x94   : > { %v527_v41 = vsel %vm524_vm4, %v521_v36, %v523_v39 }
  0x95   : > { %v646_v43 = vpop.permute.xlu0 %645  ;;  %v538_v44 = vsel %vm294_vm2, %v527_v41, 0 }
  0x97   : > { %2571 = vmatmul.mubr.msk.bf16.vlgmr.msra.gmra.mrb[4].mxu0 %vm290_vm3, %v255_v40  ;;  %v648_v45 = vpop.permute.xlu1 %647 }
  0x98   : > { %541 = vmatpush1.bf16.msra.mxu0 %v532_v42  ;;  %572 = vmatprep.mubr.bf16.mxu0 %v2840_v6  ;;  %v654_v47 = vsel %vm653_vm5, %v646_v43, %v648_v45 }
  0x99   : > { %2695 = vmatmul.mubr.msk.bf16.vlgmr.msra.gmra.mrb[4].mxu1 %vm290_vm3, %v255_v40  ;;  %v650_v46 = vpop.permute.xlu0 %649  ;;  %v661_v52 = vsel %vm294_vm2, %v654_v47, 0  ;;  %v2593_v40 = vld [vmem:[%s3280_s2 + $0x1c] sm:$0xf] }
  0x9a   : > { %2699 = vmatpush3.bf16.msra.mxu1 %v538_v44  ;;  %v655_v48 = vsel %vm653_vm5, %v648_v45, %v650_v46  ;;  %2700 = vmatprep.mubr.msk.bf16.mxu1 %vm2841_vm0, %v2839_v5  ;;  %v2597_v44 = vld [vmem:[%s3280_s2 + $0x20] sm:$0xf] }
  0x9b   : > { %2578 = vmatprep.subr.msk.bf16.mxu0 %vm294_vm2, %v655_v48  ;;  %v652_v49 = vpop.permute.xlu1 %651  ;;  %2704 = vmatprep.subr.bf16.mxu1 %v2839_v5 }
  0x9c   : > { %v656_v51 = vsel %vm653_vm5, %v650_v46, %v652_v49 }
  0x9d   : > { %v775_v53 = vpop.permute.xlu0 %774  ;;  %v667_v54 = vsel %vm294_vm2, %v656_v51, 0 }
  0x9f   : > { %2575 = vmatmul.mubr.msk.bf16.vlgmr.msra.gmra.mrb[8].mxu0 %vm290_vm3, %v2573_v50  ;;  %v777_v55 = vpop.permute.xlu1 %776 }
  0xa0   : > { %670 = vmatpush1.bf16.msra.mxu0 %v661_v52  ;;  %701 = vmatprep.mubr.bf16.mxu0 %v2840_v6  ;;  %v783_v57 = vsel %vm782_vm6, %v775_v53, %v777_v55 }
  0xa1   : > { %2701 = vmatmul.mubr.msk.bf16.vlgmr.msra.gmra.mrb[8].mxu1 %vm290_vm3, %v2573_v50  ;;  %v779_v56 = vpop.permute.xlu0 %778  ;;  %v790_v62 = vsel %vm294_vm2, %v783_v57, 0 }
  0xa2   : > { %2705 = vmatpush3.bf16.msra.mxu1 %v667_v54  ;;  %v784_v58 = vsel %vm782_vm6, %v777_v55, %v779_v56  ;;  %2706 = vmatprep.mubr.msk.bf16.mxu1 %vm2841_vm0, %v2839_v5 }
  0xa3   : > { %2582 = vmatprep.subr.msk.bf16.mxu0 %vm294_vm2, %v784_v58  ;;  %v781_v59 = vpop.permute.xlu1 %780  ;;  %2710 = vmatprep.subr.bf16.mxu1 %v2839_v5 }
  0xa4   : > { %v785_v61 = vsel %vm782_vm6, %v779_v56, %v781_v59 }
  0xa5   : > { %v904_v63 = vpop.permute.xlu0 %903  ;;  %v796_v0 = vsel %vm294_vm2, %v785_v61, 0 }
  0xa7   : > { %2579 = vmatmul.mubr.msk.bf16.vlgmr.msra.gmra.mrb[12].mxu0 %vm290_vm3, %v2577_v60  ;;  %v906_v1 = vpop.permute.xlu1 %905 }
  0xa8   : > { %799 = vmatpush1.bf16.msra.mxu0 %v790_v62  ;;  %830 = vmatprep.mubr.bf16.mxu0 %v2840_v6  ;;  %v912_v4 = vsel %vm911_vm7, %v904_v63, %v906_v1 }
  0xa9   : > { %2707 = vmatmul.mubr.msk.bf16.vlgmr.msra.gmra.mrb[12].mxu1 %vm290_vm3, %v2577_v60  ;;  %v908_v2 = vpop.permute.xlu0 %907  ;;  %v919_v11 = vsel %vm294_vm2, %v912_v4, 0 }
  0xaa   : > { %2711 = vmatpush3.bf16.msra.mxu1 %v796_v0  ;;  %v913_v7 = vsel %vm911_vm7, %v906_v1, %v908_v2  ;;  %2712 = vmatprep.mubr.msk.bf16.mxu1 %vm2841_vm0, %v2839_v5 }
  0xab   : > { %2586 = vmatprep.subr.msk.bf16.mxu0 %vm294_vm2, %v913_v7  ;;  %v910_v8 = vpop.permute.xlu1 %909  ;;  %2716 = vmatprep.subr.bf16.mxu1 %v2839_v5 }
  0xac   : > { %v914_v10 = vsel %vm911_vm7, %v908_v2, %v910_v8 }
  0xad   : > { %v1033_v12 = vpop.permute.xlu0 %1032  ;;  %v925_v13 = vsel %vm294_vm2, %v914_v10, 0 }
  0xaf   : > { %2583 = vmatmul.mubr.msk.bf16.vlgmr.msra.gmra.mrb[16].mxu0 %vm290_vm3, %v2581_v9  ;;  %v1035_v14 = vpop.permute.xlu1 %1034 }
  0xb0   : > { %928 = vmatpush1.bf16.msra.mxu0 %v919_v11  ;;  %959 = vmatprep.mubr.bf16.mxu0 %v2840_v6  ;;  %v1041_v16 = vsel %vm1040_vm8, %v1033_v12, %v1035_v14 }
  0xb1   : > { %2713 = vmatmul.mubr.msk.bf16.vlgmr.msra.gmra.mrb[16].mxu1 %vm290_vm3, %v2581_v9  ;;  %v1037_v15 = vpop.permute.xlu0 %1036  ;;  %v1048_v22 = vsel %vm294_vm2, %v1041_v16, 0 }
  0xb2   : > { %2717 = vmatpush3.bf16.msra.mxu1 %v925_v13  ;;  %v1042_v17 = vsel %vm1040_vm8, %v1035_v14, %v1037_v15  ;;  %2718 = vmatprep.mubr.msk.bf16.mxu1 %vm2841_vm0, %v2839_v5 }
  0xb3   : > { %2590 = vmatprep.subr.msk.bf16.mxu0 %vm294_vm2, %v1042_v17  ;;  %v1039_v18 = vpop.permute.xlu1 %1038  ;;  %2722 = vmatprep.subr.bf16.mxu1 %v2839_v5 }
  0xb4   : > { %v1043_v21 = vsel %vm1040_vm8, %v1037_v15, %v1039_v18 }
  0xb5   : > { %v1162_v23 = vpop.permute.xlu0 %1161  ;;  %v1054_v24 = vsel %vm294_vm2, %v1043_v21, 0 }
  0xb7   : > { %2587 = vmatmul.mubr.msk.bf16.vlgmr.msra.gmra.mrb[20].mxu0 %vm290_vm3, %v2585_v19  ;;  %v1164_v25 = vpop.permute.xlu1 %1163 }
  0xb8   : > { %1057 = vmatpush1.bf16.msra.mxu0 %v1048_v22  ;;  %1088 = vmatprep.mubr.bf16.mxu0 %v2840_v6  ;;  %v1170_v27 = vsel %vm1169_vm9, %v1162_v23, %v1164_v25 }
  0xb9   : > { %2719 = vmatmul.mubr.msk.bf16.vlgmr.msra.gmra.mrb[20].mxu1 %vm290_vm3, %v2585_v19  ;;  %v1166_v26 = vpop.permute.xlu0 %1165  ;;  %v1177_v32 = vsel %vm294_vm2, %v1170_v27, 0 }
  0xba   : > { %2723 = vmatpush3.bf16.msra.mxu1 %v1054_v24  ;;  %v1171_v28 = vsel %vm1169_vm9, %v1164_v25, %v1166_v26  ;;  %2724 = vmatprep.mubr.msk.bf16.mxu1 %vm2841_vm0, %v2839_v5 }
  0xbb   : > { %2594 = vmatprep.subr.msk.bf16.mxu0 %vm294_vm2, %v1171_v28  ;;  %v1168_v29 = vpop.permute.xlu1 %1167  ;;  %2728 = vmatprep.subr.bf16.mxu1 %v2839_v5 }
  0xbc   : > { %v1172_v31 = vsel %vm1169_vm9, %v1166_v26, %v1168_v29 }
  0xbd   : > { %v1291_v33 = vpop.permute.xlu0 %1290  ;;  %v1183_v34 = vsel %vm294_vm2, %v1172_v31, 0 }
  0xbf   : > { %2591 = vmatmul.mubr.msk.bf16.vlgmr.msra.gmra.mrb[24].mxu0 %vm290_vm3, %v2589_v30  ;;  %v1293_v35 = vpop.permute.xlu1 %1292 }
  0xc0   : > { %1186 = vmatpush1.bf16.msra.mxu0 %v1177_v32  ;;  %1217 = vmatprep.mubr.bf16.mxu0 %v2840_v6  ;;  %v1299_v37 = vsel %vm1298_vm10, %v1291_v33, %v1293_v35 }
  0xc1   : > { %2725 = vmatmul.mubr.msk.bf16.vlgmr.msra.gmra.mrb[24].mxu1 %vm290_vm3, %v2589_v30  ;;  %v1295_v36 = vpop.permute.xlu0 %1294  ;;  %v1306_v42 = vsel %vm294_vm2, %v1299_v37, 0 }
  0xc2   : > { %2729 = vmatpush3.bf16.msra.mxu1 %v1183_v34  ;;  %v1300_v38 = vsel %vm1298_vm10, %v1293_v35, %v1295_v36  ;;  %2730 = vmatprep.mubr.msk.bf16.mxu1 %vm2841_vm0, %v2839_v5 }
  0xc3   : > { %2598 = vmatprep.subr.msk.bf16.mxu0 %vm294_vm2, %v1300_v38  ;;  %v1297_v39 = vpop.permute.xlu1 %1296  ;;  %2734 = vmatprep.subr.bf16.mxu1 %v2839_v5 }
  0xc4   : > { %v1301_v41 = vsel %vm1298_vm10, %v1295_v36, %v1297_v39 }
  0xc5   : > { %v1312_v43 = vsel %vm294_vm2, %v1301_v41, 0  ;;  %vm1467_vm2 = vcmask 154624  }
  0xc7   : > { %2595 = vmatmul.mubr.msk.bf16.vlgmr.msra.gmra.mrb[28].mxu0 %vm290_vm3, %v2593_v40 }
  0xc8   : > { %1315 = vmatpush1.bf16.msra.mxu0 %v1306_v42  ;;  %1346 = vmatprep.mubr.bf16.mxu0 %v2840_v6 }
  0xc9   : > { %2731 = vmatmul.mubr.msk.bf16.vlgmr.msra.gmra.mrb[28].mxu1 %vm290_vm3, %v2593_v40 }
  0xca   : > { %2735 = vmatpush3.bf16.msra.mxu1 %v1312_v43  ;;  %2736 = vmatprep.mubr.msk.bf16.mxu1 %vm2841_vm0, %v2839_v5 }
  0xcb   : > { %2740 = vmatprep.subr.bf16.mxu1 %v2839_v5 }
  0xcf   : > { %2599 = vmatmul.mubr.msk.bf16.vlgmr.msra.gmra.mrb[32].mxu0 %vm290_vm3, %v2597_v44 }
  0xd0   : > { %1555 = vmatprep.mubr.bf16.mxu0 %v2840_v6 }
  0xd1   : > { %2737 = vmatmul.mubr.msk.bf16.vlgmr.msra.gmra.mrb[32].mxu1 %vm290_vm3, %v2597_v44  ;;  %vm1469_vm3 = vcmask 1043456  }
  0xd2   : > { %2742 = vmatprep.mubr.msk.bf16.mxu1 %vm2841_vm0, %v2839_v5 }
 0x162   : > { %v338_v45 = vpop.f32.mrb[0].mxu0 }
 0x163   : > { %v340_v46 = vpop.f32.mrb[1].mxu0 }
 0x164   : > { %v342_v47 = vpop.f32.mrb[2].mxu0  ;;  %v379_v48 = vpop.f32.mrb[0].mxu1 }
 0x165   : > { %v343_v49 = vpop.f32.mrb[3].mxu0  ;;  %v2690_v50 = vpop.f32.mrb[1].mxu1 }
 0x166   : > { %v382_v51 = vpop.f32.mrb[2].mxu1 }
 0x167   : > { %v2691_v52 = vpop.f32.mrb[3].mxu1 }
 0x16a   : > { %v448_v53 = vpop.f32.mrb[4].mxu0 }
 0x16b   : > { %v449_v54 = vadd.f32 %v448_v53, %v338_v45  ;;  %v450_v55 = vpop.f32.mrb[5].mxu0 }
 0x16c   : > { %v451_v56 = vadd.f32 %v450_v55, %v340_v46  ;;  %v452_v57 = vpop.f32.mrb[6].mxu0  ;;  %v489_v58 = vpop.f32.mrb[4].mxu1 }
 0x16d   : > { %v490_v59 = vadd.f32 %v489_v58, %v379_v48  ;;  %v453_v60 = vpop.f32.mrb[7].mxu0  ;;  %v2696_v61 = vpop.f32.mrb[5].mxu1 }
 0x16e   : > { %v492_v62 = vpop.f32.mrb[6].mxu1 }
 0x16f   : > { %v2697_v63 = vpop.f32.mrb[7].mxu1 }
 0x172   : > { %v574_v0 = vpop.f32.mrb[8].mxu0 }
 0x173   : > { %v621_v1 = vadd.f32 %v574_v0, %v449_v54  ;;  %v576_v2 = vpop.f32.mrb[9].mxu0 }
 0x174   : > { %v622_v4 = vadd.f32 %v576_v2, %v451_v56  ;;  %v578_v7 = vpop.f32.mrb[10].mxu0  ;;  %v615_v8 = vpop.f32.mrb[8].mxu1 }
 0x175   : > { %v623_v9 = vadd.f32 %v615_v8, %v490_v59  ;;  %v579_v10 = vpop.f32.mrb[11].mxu0  ;;  %v2702_v11 = vpop.f32.mrb[9].mxu1 }
 0x176   : > { %v618_v12 = vpop.f32.mrb[10].mxu1  ;;  %v1402_v10 = vpop.permute.xlu0 %1401 }
 0x177   : > { %v2703_v13 = vpop.f32.mrb[11].mxu1 }
 0x178   : > { %v1418_v13 = vpop.permute.xlu1 %1417 }
 0x17a   : > { %v703_v14 = vpop.f32.mrb[12].mxu0 }
 0x17b   : > { %v750_v15 = vadd.f32 %v703_v14, %v621_v1  ;;  %v705_v16 = vpop.f32.mrb[13].mxu0 }
 0x17c   : > { %v751_v17 = vadd.f32 %v705_v16, %v622_v4  ;;  %v707_v18 = vpop.f32.mrb[14].mxu0  ;;  %v744_v19 = vpop.f32.mrb[12].mxu1 }
 0x17d   : > { %v752_v21 = vadd.f32 %v744_v19, %v623_v9  ;;  %v708_v22 = vpop.f32.mrb[15].mxu0  ;;  %v2708_v23 = vpop.f32.mrb[13].mxu1 }
 0x17e   : > { %v747_v24 = vpop.f32.mrb[14].mxu1 }
 0x17f   : > { %v2709_v25 = vpop.f32.mrb[15].mxu1  ;;  %v1430_v24 = vld [vmem:[%s3279_s1] sm:$0x7] }
 0x180   : > { %v1434_v25 = vsub.s32 0, %v2898_v3 }
 0x182   : > { %v832_v26 = vpop.f32.mrb[16].mxu0 }
 0x183   : > { %v879_v27 = vadd.f32 %v832_v26, %v750_v15  ;;  %v834_v28 = vpop.f32.mrb[17].mxu0 }
 0x184   : > { %v880_v29 = vadd.f32 %v834_v28, %v751_v17  ;;  %v836_v30 = vpop.f32.mrb[18].mxu0  ;;  %v873_v31 = vpop.f32.mrb[16].mxu1 }
 0x185   : > { %v881_v32 = vadd.f32 %v873_v31, %v752_v21  ;;  %v837_v33 = vpop.f32.mrb[19].mxu0  ;;  %v2714_v34 = vpop.f32.mrb[17].mxu1  ;;  %v1442_v31 = vsub.s32 2, %v2898_v3 }
 0x186   : > { %v876_v35 = vpop.f32.mrb[18].mxu1  ;;  %v1425_v34 = vpop.permute.xlu1 %1424 }
 0x187   : > { %v2715_v36 = vpop.f32.mrb[19].mxu1 }
 0x18a   : > { %v961_v37 = vpop.f32.mrb[20].mxu0 }
 0x18b   : > { %v1008_v38 = vadd.f32 %v961_v37, %v879_v27  ;;  %v963_v39 = vpop.f32.mrb[21].mxu0  ;;  %v1435_v37 = vrot.slane %v1430_v24, %v1434_v25 }
 0x18c   : > { %v1009_v40 = vadd.f32 %v963_v39, %v880_v29  ;;  %v965_v41 = vpop.f32.mrb[22].mxu0  ;;  %v1002_v42 = vpop.f32.mrb[20].mxu1  ;;  %v1438_v29 = vsub.s32 1, %v2898_v3 }
 0x18d   : > { %v1010_v43 = vadd.f32 %v1002_v42, %v881_v32  ;;  %v966_v44 = vpop.f32.mrb[23].mxu0  ;;  %v2720_v45 = vpop.f32.mrb[21].mxu1 }
 0x18e   : > { %v1005_v46 = vpop.f32.mrb[22].mxu1 }
 0x18f   : > { %v2721_v47 = vpop.f32.mrb[23].mxu1 }
 0x192   : > { %v1090_v48 = vpop.f32.mrb[24].mxu0 }
 0x193   : > { %v1137_v49 = vadd.f32 %v1090_v48, %v1008_v38  ;;  %v1092_v50 = vpop.f32.mrb[25].mxu0 }
 0x194   : > { %v1138_v51 = vadd.f32 %v1092_v50, %v1009_v40  ;;  %v1094_v52 = vpop.f32.mrb[26].mxu0  ;;  %v1131_v53 = vpop.f32.mrb[24].mxu1  ;;  %v1439_v40 = vrot.slane %v1430_v24, %v1438_v29 }
 0x195   : > { %v1139_v54 = vadd.f32 %v1131_v53, %v1010_v43  ;;  %v1095_v55 = vpop.f32.mrb[27].mxu0  ;;  %v2726_v56 = vpop.f32.mrb[25].mxu1  ;;  %v1443_v43 = vrot.slane %v1430_v24, %v1442_v31 }
 0x196   : > { %v1134_v57 = vpop.f32.mrb[26].mxu1 }
 0x197   : > { %v2727_v58 = vpop.f32.mrb[27].mxu1 }
 0x19a   : > { %v1219_v59 = vpop.f32.mrb[28].mxu0 }
 0x19b   : > { %v1266_v60 = vadd.f32 %v1219_v59, %v1137_v49  ;;  %v1221_v61 = vpop.f32.mrb[29].mxu0 }
 0x19c   : > { %v1267_v62 = vadd.f32 %v1221_v61, %v1138_v51  ;;  %v1223_v63 = vpop.f32.mrb[30].mxu0  ;;  %v1260_v0 = vpop.f32.mrb[28].mxu1 }
 0x19d   : > { %v1268_v1 = vadd.f32 %v1260_v0, %v1139_v54  ;;  %v1224_v2 = vpop.f32.mrb[31].mxu0  ;;  %v2732_v4 = vpop.f32.mrb[29].mxu1  ;;  %v2468_v63 = vld [vmem:[%s3283_s5] sm:$0xff] }
 0x19e   : > { %v1263_v7 = vpop.f32.mrb[30].mxu1 }
 0x19f   : > { %v2733_v8 = vpop.f32.mrb[31].mxu1 }
 0x1a2   : > { %v1348_v9 = vpop.f32.mrb[32].mxu0 }
 0x1a3   : > { %v1395_v11 = vadd.f32 %v1348_v9, %v1266_v60  ;;  %v1350_v12 = vpop.f32.mrb[33].mxu0 }
 0x1a4   : > { %v1396_v14 = vadd.f32 %v1350_v12, %v1267_v62  ;;  %v1352_v15 = vpop.f32.mrb[34].mxu0  ;;  %v1389_v16 = vpop.f32.mrb[32].mxu1 }
 0x1a5   : > { %v1404_v17 = vadd.f32 %v1402_v10, %v1395_v11  ;;  %v1397_v18 = vadd.f32 %v1389_v16, %v1268_v1  ;;  %v1353_v19 = vpop.f32.mrb[35].mxu0  ;;  %v2738_v21 = vpop.f32.mrb[33].mxu1 }
 0x1a6   : > { %v1405_v22 = vadd.f32 %v1402_v10, %v1396_v14  ;;  %v1392_v23 = vpop.f32.mrb[34].mxu1 }
 0x1a7   : > { %v1410_v26 = vmul.f32 0.01, %v1404_v17  ;;  %v1406_v27 = vadd.f32 %v1402_v10, %v1397_v18  ;;  %vm1407_vm11 = vcmp.gt.f32.partialorder %v1404_v17, 0.0  ;;  %v2739_v28 = vpop.f32.mrb[35].mxu1  ;;  %v1482_v23 = vld [vmem:[%s3282_s4] sm:$0xf] }
 0x1a8   : > { %v1411_v30 = vmul.f32 0.01, %v1405_v22  ;;  %vm1408_vm12 = vcmp.gt.f32.partialorder %v1405_v22, 0.0 }
 0x1a9   : > { %v1412_v32 = vmul.f32 0.01, %v1406_v27  ;;  %vm1409_vm13 = vcmp.gt.f32.partialorder %v1406_v27, 0.0  ;;  %v1413_v33 = vsel %vm1407_vm11, %v1404_v17, %v1410_v26  ;;  %vm1479_vm11 = vcmask 154628  }
 0x1aa   : > { %v1414_v35 = vsel %vm1408_vm12, %v1405_v22, %v1411_v30  ;;  %v1420_v36 = vmul.f32 %v1418_v13, %v1413_v33  ;;  %vm1476_vm12 = vmor %vm1475_vm15, %vm1474_vm14  ;;  %vm1510_vm14 = vcmask 64512   ;;  %v2617_v33 = vld [vmem:[%s3282_s4 + $0x8] sm:$0xf] }
 0x1ab   : > { %v1415_v38 = vsel %vm1409_vm13, %v1406_v27, %v1412_v32  ;;  %v1421_v39 = vmul.f32 %v1418_v13, %v1414_v35  ;;  %vm1480_vm13 = vmor %vm1479_vm11, %vm1469_vm3 }
 0x1ac   : > { %v1422_v41 = vmul.f32 %v1418_v13, %v1415_v38  ;;  %v1427_v42 = vadd.f32 %v1425_v34, %v1420_v36 }
 0x1ad   : > { %v1428_v44 = vadd.f32 %v1425_v34, %v1421_v39 }
 0x1ae   : > { %v1429_v45 = vadd.f32 %v1425_v34, %v1422_v41  ;;  %v1447_v46 = vmul.f32 %v1435_v37, %v1427_v42 }
 0x1af   : > { %v1448_v47 = vmul.f32 %v1439_v40, %v1428_v44 }
 0x1b0   : > { %v1449_v48 = vmul.f32 %v1443_v43, %v1429_v45  ;;  %v2621_v43 = vld [vmem:[%s3282_s4 + $0xc] sm:$0xf] }
 0x1b1   : > { %v2648_v49 = vpack.c.bf16 %v1448_v47, %v1447_v46 }
 0x1b2   : > { %v2649_v3 = vpack.c.bf16 %v1449_v48, %v1449_v48 }
 0x1b3   : > { %1461 = vrot.lane.b32.xlu0 %v2648_v49, %s2852_s19 }
 0x1b4   : > { %1463 = vrot.lane.b32.xlu1 %v2649_v3, %s2852_s19 }
 0x225   : > { %v1462_v50 = vpop.permute.xlu0 %1461 }
 0x226   : > { %v1465_v51 = vrot.slane %v1462_v50, 4  ;;  %v1464_v52 = vpop.permute.xlu1 %1463 }
 0x227   : > { %v1466_v53 = vrot.slane %v1464_v52, 4 }
 0x228   : > { %v1468_v54 = vsel %vm1467_vm2, %v1465_v51, %v1462_v50 }
 0x229   : > { %1477 = vst.msk [vmem:[#allocation2] sm:$0xff] %vm1476_vm12, %v1468_v54  ;;  %v1470_v55 = vsel %vm1469_vm3, %v1465_v51, %v1466_v53 }
 0x22a   : > { %v1471_v56 = vsel %vm1467_vm2, %v1470_v55, %v1464_v52  ;;  %v2625_v52 = vld [vmem:[%s3282_s4 + $0x10] sm:$0xf] }
 0x22b   : > { %1481 = vst.msk [vmem:[#allocation2 + $0x8] sm:$0xff] %vm1480_vm13, %v1471_v56 }
 0x230   : > { %v1487_v57 = vld [vmem:[#allocation2] sm:$0xff] }
 0x231   : > { %v3096_v58 = vcombine.low %v1487_v57, %v1487_v57  ;;  %v2605_v59 = vcombine.high %v1487_v57, %v1487_v57 }
 0x232   : > { %v1488_v60 = vld [vmem:[#allocation2 + $0x8] sm:$0xff] }
 0x233   : > { %1499 = vrot.lane.b32.xlu0 %v3096_v58, %s2842_s27  ;;  %1501 = vrot.lane.b32.xlu1 %v2605_v59, %s2842_s27  ;;  %v2607_v61 = vcombine.high %v1488_v60, %v1488_v60  ;;  %v2606_v62 = vcombine.low %v1488_v60, %v1488_v60  ;;  %v2829_v12 = vld [vmem:[#allocation2 + $0x8] ss:$0 sps:$4 sm:$0xff]   ;;  %v1616_v15 = vsel %vm1469_vm3, %v3096_v58, 0 }
 0x234   : > { %v1622_v16 = vsel %vm1469_vm3, %v2829_v12, 0 }
 0x237   : > { %1505 = vrot.lane.b32.xlu1 %v2607_v61, %s2842_s27  ;;  %1503 = vrot.lane.b32.xlu0 %v2606_v62, %s2842_s27 }
 0x23b   : > { %1709 = vrot.lane.b32.xlu1 %v2605_v59, %s2843_s28  ;;  %1707 = vrot.lane.b32.xlu0 %v3096_v58, %s2843_s28 }
 0x23f   : > { %1713 = vrot.lane.b32.xlu1 %v2607_v61, %s2843_s28  ;;  %1711 = vrot.lane.b32.xlu0 %v2606_v62, %s2843_s28  ;;  %s251_s28 = scalar_lea.vmem %s3284_s6, %s2794_s18 }
 0x243   : > { %1818 = vrot.lane.b32.xlu1 %v2605_v59, %s2844_s29  ;;  %1816 = vrot.lane.b32.xlu0 %v3096_v58, %s2844_s29 }
 0x247   : > { %1822 = vrot.lane.b32.xlu1 %v2607_v61, %s2844_s29  ;;  %1820 = vrot.lane.b32.xlu0 %v2606_v62, %s2844_s29 }
 0x24b   : > { %1927 = vrot.lane.b32.xlu1 %v2605_v59, %s2845_s30  ;;  %1925 = vrot.lane.b32.xlu0 %v3096_v58, %s2845_s30 }
 0x24f   : > { %1931 = vrot.lane.b32.xlu1 %v2607_v61, %s2845_s30  ;;  %1929 = vrot.lane.b32.xlu0 %v2606_v62, %s2845_s30 }
 0x253   : > { %2036 = vrot.lane.b32.xlu1 %v2605_v59, %s2846_s7  ;;  %2034 = vrot.lane.b32.xlu0 %v3096_v58, %s2846_s7 }
 0x257   : > { %2040 = vrot.lane.b32.xlu1 %v2607_v61, %s2846_s7  ;;  %2038 = vrot.lane.b32.xlu0 %v2606_v62, %s2846_s7 }
 0x25b   : > { %2145 = vrot.lane.b32.xlu1 %v2605_v59, %s2847_s8  ;;  %2143 = vrot.lane.b32.xlu0 %v3096_v58, %s2847_s8 }
 0x25f   : > { %2149 = vrot.lane.b32.xlu1 %v2607_v61, %s2847_s8  ;;  %2147 = vrot.lane.b32.xlu0 %v2606_v62, %s2847_s8 }
 0x263   : > { %2254 = vrot.lane.b32.xlu1 %v2605_v59, %s2848_s9  ;;  %2252 = vrot.lane.b32.xlu0 %v3096_v58, %s2848_s9 }
 0x267   : > { %2258 = vrot.lane.b32.xlu1 %v2607_v61, %s2848_s9  ;;  %2256 = vrot.lane.b32.xlu0 %v2606_v62, %s2848_s9 }
 0x26b   : > { %2363 = vrot.lane.b32.xlu1 %v2605_v59, %s2849_s10  ;;  %2361 = vrot.lane.b32.xlu0 %v3096_v58, %s2849_s10 }
 0x26f   : > { %2367 = vrot.lane.b32.xlu1 %v2607_v61, %s2849_s10  ;;  %2365 = vrot.lane.b32.xlu0 %v2606_v62, %s2849_s10  ;;  %v2629_v62 = vld [vmem:[%s3282_s4 + $0x14] sm:$0xf] }
 0x273   : > { %2471 = vperm.xlu0 %2818, %v2468_v63   ;;  %2487 = vperm.xlu1 %2821, %v2468_v63  }
 0x277   : > { %2822 = vset.pattern.permute.xlu0 %v2851_v20  ;;  %v2603_v20 = vld [vmem:[%s3282_s4 + $0x4] sm:$0xf] }
 0x278   : > { %2494 = vperm.xlu0 %2822, %v2468_v63  }
 0x2a5   : > { %v1500_v0 = vpop.permute.xlu0 %1499  ;;  %v1502_v1 = vpop.permute.xlu1 %1501 }
 0x2a6   : > { %v1507_v2 = vsel %vm286_vm1, %v1500_v0, %v1502_v1 }
 0x2a7   : > { %v1515_v10 = vsel %vm1469_vm3, %v1507_v2, 0 }
 0x2a9   : > { %v1504_v4 = vpop.permute.xlu0 %1503  ;;  %v1506_v7 = vpop.permute.xlu1 %1505 }
 0x2aa   : > { %v1508_v8 = vsel %vm286_vm1, %v1502_v1, %v1504_v4  ;;  %v1509_v9 = vsel %vm286_vm1, %v1504_v4, %v1506_v7 }
 0x2ab   : > { %v1521_v11 = vsel %vm1469_vm3, %v1509_v9, 0  ;;  %2608 = vmatprep.subr.msk.bf16.mxu0 %vm1469_vm3, %v1508_v8 }
 0x2ac   : > { %1524 = vmatpush1.bf16.msra.mxu0 %v1515_v10  ;;  %2741 = vmatpush3.bf16.msra.mxu1 %v1521_v11  ;;  %v2633_v11 = vld [vmem:[%s3282_s4 + $0x18] sm:$0xf] }
 0x2ad   : > { %v1708_v13 = vpop.permute.xlu0 %1707  ;;  %2614 = vmatprep.subr.msk.bf16.mxu0 %vm1469_vm3, %v2605_v59  ;;  %v1710_v14 = vpop.permute.xlu1 %1709  ;;  %2746 = vmatprep.subr.bf16.mxu1 %v2839_v5 }
 0x2ae   : > { %v1715_v21 = vsel %vm524_vm4, %v1708_v13, %v1710_v14 }
 0x2af   : > { %2609 = vmatmul.mubr.msk.bf16.vlgmr.msra.gmra.mrb[36].mxu0 %vm1510_vm14, %v2603_v20  ;;  %2743 = vmatmul.mubr.msk.bf16.vlgmr.msra.gmra.mrb[36].mxu1 %vm1510_vm14, %v2603_v20  ;;  %v1722_v26 = vsel %vm1469_vm3, %v1715_v21, 0  ;;  %v2637_v21 = vld [vmem:[%s3282_s4 + $0x1c] sm:$0xf] }
 0x2b0   : > { %1625 = vmatpush1.bf16.msra.mxu0 %v1616_v15  ;;  %2747 = vmatpush3.bf16.msra.mxu1 %v1622_v16 }
 0x2b1   : > { %v1712_v17 = vpop.permute.xlu0 %1711  ;;  %v1714_v18 = vpop.permute.xlu1 %1713  ;;  %1656 = vmatprep.mubr.bf16.mxu0 %v2840_v6  ;;  %2748 = vmatprep.mubr.msk.bf16.mxu1 %vm2841_vm0, %v2839_v5 }
 0x2b2   : > { %v1716_v19 = vsel %vm524_vm4, %v1710_v14, %v1712_v17  ;;  %2752 = vmatprep.subr.bf16.mxu1 %v2839_v5  ;;  %v1717_v22 = vsel %vm524_vm4, %v1712_v17, %v1714_v18 }
 0x2b3   : > { %2618 = vmatprep.subr.msk.bf16.mxu0 %vm1469_vm3, %v1716_v19  ;;  %v1728_v27 = vsel %vm1469_vm3, %v1717_v22, 0 }
 0x2b5   : > { %v1817_v24 = vpop.permute.xlu0 %1816  ;;  %v1819_v25 = vpop.permute.xlu1 %1818 }
 0x2b6   : > { %v1824_v31 = vsel %vm653_vm5, %v1817_v24, %v1819_v25  ;;  %v2641_v24 = vld [vmem:[%s3282_s4 + $0x20] sm:$0xf] }
 0x2b7   : > { %2615 = vmatmul.mubr.msk.bf16.vlgmr.msra.gmra.mrb[40].mxu0 %vm1510_vm14, %v1482_v23  ;;  %2749 = vmatmul.mubr.msk.bf16.vlgmr.msra.gmra.mrb[40].mxu1 %vm1510_vm14, %v1482_v23  ;;  %v1831_v36 = vsel %vm1469_vm3, %v1824_v31, 0 }
 0x2b8   : > { %1731 = vmatpush1.bf16.msra.mxu0 %v1722_v26  ;;  %2753 = vmatpush3.bf16.msra.mxu1 %v1728_v27 }
 0x2b9   : > { %v1821_v28 = vpop.permute.xlu0 %1820  ;;  %v1823_v29 = vpop.permute.xlu1 %1822  ;;  %1762 = vmatprep.mubr.bf16.mxu0 %v2840_v6  ;;  %2754 = vmatprep.mubr.msk.bf16.mxu1 %vm2841_vm0, %v2839_v5 }
 0x2ba   : > { %v1825_v30 = vsel %vm653_vm5, %v1819_v25, %v1821_v28  ;;  %2758 = vmatprep.subr.bf16.mxu1 %v2839_v5  ;;  %v1826_v32 = vsel %vm653_vm5, %v1821_v28, %v1823_v29 }
 0x2bb   : > { %2622 = vmatprep.subr.msk.bf16.mxu0 %vm1469_vm3, %v1825_v30  ;;  %v1837_v37 = vsel %vm1469_vm3, %v1826_v32, 0 }
 0x2bd   : > { %v1926_v34 = vpop.permute.xlu0 %1925  ;;  %v1928_v35 = vpop.permute.xlu1 %1927 }
 0x2be   : > { %v1933_v41 = vsel %vm782_vm6, %v1926_v34, %v1928_v35 }
 0x2bf   : > { %2619 = vmatmul.mubr.msk.bf16.vlgmr.msra.gmra.mrb[44].mxu0 %vm1510_vm14, %v2617_v33  ;;  %2755 = vmatmul.mubr.msk.bf16.vlgmr.msra.gmra.mrb[44].mxu1 %vm1510_vm14, %v2617_v33  ;;  %v1940_v46 = vsel %vm1469_vm3, %v1933_v41, 0 }
 0x2c0   : > { %1840 = vmatpush1.bf16.msra.mxu0 %v1831_v36  ;;  %2759 = vmatpush3.bf16.msra.mxu1 %v1837_v37 }
 0x2c1   : > { %v1930_v38 = vpop.permute.xlu0 %1929  ;;  %v1932_v39 = vpop.permute.xlu1 %1931  ;;  %1871 = vmatprep.mubr.bf16.mxu0 %v2840_v6  ;;  %2760 = vmatprep.mubr.msk.bf16.mxu1 %vm2841_vm0, %v2839_v5 }
 0x2c2   : > { %v1934_v40 = vsel %vm782_vm6, %v1928_v35, %v1930_v38  ;;  %2764 = vmatprep.subr.bf16.mxu1 %v2839_v5  ;;  %v1935_v42 = vsel %vm782_vm6, %v1930_v38, %v1932_v39 }
 0x2c3   : > { %2626 = vmatprep.subr.msk.bf16.mxu0 %vm1469_vm3, %v1934_v40  ;;  %v1946_v47 = vsel %vm1469_vm3, %v1935_v42, 0 }
 0x2c5   : > { %v2035_v44 = vpop.permute.xlu0 %2034  ;;  %v2037_v45 = vpop.permute.xlu1 %2036 }
 0x2c6   : > { %v2042_v50 = vsel %vm911_vm7, %v2035_v44, %v2037_v45 }
 0x2c7   : > { %2623 = vmatmul.mubr.msk.bf16.vlgmr.msra.gmra.mrb[48].mxu0 %vm1510_vm14, %v2621_v43  ;;  %2761 = vmatmul.mubr.msk.bf16.vlgmr.msra.gmra.mrb[48].mxu1 %vm1510_vm14, %v2621_v43  ;;  %v2049_v55 = vsel %vm1469_vm3, %v2042_v50, 0 }
 0x2c8   : > { %1949 = vmatpush1.bf16.msra.mxu0 %v1940_v46  ;;  %2765 = vmatpush3.bf16.msra.mxu1 %v1946_v47 }
 0x2c9   : > { %v2039_v48 = vpop.permute.xlu0 %2038  ;;  %v2041_v49 = vpop.permute.xlu1 %2040  ;;  %1980 = vmatprep.mubr.bf16.mxu0 %v2840_v6  ;;  %2766 = vmatprep.mubr.msk.bf16.mxu1 %vm2841_vm0, %v2839_v5 }
 0x2ca   : > { %v2043_v3 = vsel %vm911_vm7, %v2037_v45, %v2039_v48  ;;  %2770 = vmatprep.subr.bf16.mxu1 %v2839_v5  ;;  %v2044_v51 = vsel %vm911_vm7, %v2039_v48, %v2041_v49 }
 0x2cb   : > { %2630 = vmatprep.subr.msk.bf16.mxu0 %vm1469_vm3, %v2043_v3  ;;  %v2055_v56 = vsel %vm1469_vm3, %v2044_v51, 0 }
 0x2cd   : > { %v2144_v53 = vpop.permute.xlu0 %2143  ;;  %v2146_v54 = vpop.permute.xlu1 %2145 }
 0x2ce   : > { %v2151_v60 = vsel %vm1040_vm8, %v2144_v53, %v2146_v54 }
 0x2cf   : > { %2627 = vmatmul.mubr.msk.bf16.vlgmr.msra.gmra.mrb[52].mxu0 %vm1510_vm14, %v2625_v52  ;;  %2767 = vmatmul.mubr.msk.bf16.vlgmr.msra.gmra.mrb[52].mxu1 %vm1510_vm14, %v2625_v52  ;;  %v2158_v1 = vsel %vm1469_vm3, %v2151_v60, 0 }
 0x2d0   : > { %2058 = vmatpush1.bf16.msra.mxu0 %v2049_v55  ;;  %2771 = vmatpush3.bf16.msra.mxu1 %v2055_v56 }
 0x2d1   : > { %v2148_v57 = vpop.permute.xlu0 %2147  ;;  %v2150_v58 = vpop.permute.xlu1 %2149  ;;  %2089 = vmatprep.mubr.bf16.mxu0 %v2840_v6  ;;  %2772 = vmatprep.mubr.msk.bf16.mxu1 %vm2841_vm0, %v2839_v5 }
 0x2d2   : > { %v2152_v59 = vsel %vm1040_vm8, %v2146_v54, %v2148_v57  ;;  %2776 = vmatprep.subr.bf16.mxu1 %v2839_v5  ;;  %v2153_v61 = vsel %vm1040_vm8, %v2148_v57, %v2150_v58 }
 0x2d3   : > { %2634 = vmatprep.subr.msk.bf16.mxu0 %vm1469_vm3, %v2152_v59  ;;  %v2164_v2 = vsel %vm1469_vm3, %v2153_v61, 0 }
 0x2d5   : > { %v2253_v63 = vpop.permute.xlu0 %2252  ;;  %v2255_v0 = vpop.permute.xlu1 %2254 }
 0x2d6   : > { %v2260_v9 = vsel %vm1169_vm9, %v2253_v63, %v2255_v0 }
 0x2d7   : > { %2631 = vmatmul.mubr.msk.bf16.vlgmr.msra.gmra.mrb[56].mxu0 %vm1510_vm14, %v2629_v62  ;;  %2773 = vmatmul.mubr.msk.bf16.vlgmr.msra.gmra.mrb[56].mxu1 %vm1510_vm14, %v2629_v62  ;;  %v2267_v13 = vsel %vm1469_vm3, %v2260_v9, 0 }
 0x2d8   : > { %2167 = vmatpush1.bf16.msra.mxu0 %v2158_v1  ;;  %2777 = vmatpush3.bf16.msra.mxu1 %v2164_v2 }
 0x2d9   : > { %v2257_v4 = vpop.permute.xlu0 %2256  ;;  %v2259_v7 = vpop.permute.xlu1 %2258  ;;  %2198 = vmatprep.mubr.bf16.mxu0 %v2840_v6  ;;  %2778 = vmatprep.mubr.msk.bf16.mxu1 %vm2841_vm0, %v2839_v5 }
 0x2da   : > { %v2261_v8 = vsel %vm1169_vm9, %v2255_v0, %v2257_v4  ;;  %2782 = vmatprep.subr.bf16.mxu1 %v2839_v5  ;;  %v2262_v10 = vsel %vm1169_vm9, %v2257_v4, %v2259_v7 }
 0x2db   : > { %2638 = vmatprep.subr.msk.bf16.mxu0 %vm1469_vm3, %v2261_v8  ;;  %v2273_v14 = vsel %vm1469_vm3, %v2262_v10, 0 }
 0x2dd   : > { %v2362_v12 = vpop.permute.xlu0 %2361  ;;  %v2364_v20 = vpop.permute.xlu1 %2363 }
 0x2de   : > { %v2369_v18 = vsel %vm1298_vm10, %v2362_v12, %v2364_v20 }
 0x2df   : > { %2635 = vmatmul.mubr.msk.bf16.vlgmr.msra.gmra.mrb[60].mxu0 %vm1510_vm14, %v2633_v11  ;;  %2779 = vmatmul.mubr.msk.bf16.vlgmr.msra.gmra.mrb[60].mxu1 %vm1510_vm14, %v2633_v11  ;;  %v2376_v22 = vsel %vm1469_vm3, %v2369_v18, 0 }
 0x2e0   : > { %2276 = vmatpush1.bf16.msra.mxu0 %v2267_v13  ;;  %2783 = vmatpush3.bf16.msra.mxu1 %v2273_v14 }
 0x2e1   : > { %v2366_v15 = vpop.permute.xlu0 %2365  ;;  %v2368_v16 = vpop.permute.xlu1 %2367  ;;  %2307 = vmatprep.mubr.bf16.mxu0 %v2840_v6  ;;  %2784 = vmatprep.mubr.msk.bf16.mxu1 %vm2841_vm0, %v2839_v5 }
 0x2e2   : > { %v2370_v17 = vsel %vm1298_vm10, %v2364_v20, %v2366_v15  ;;  %2788 = vmatprep.subr.bf16.mxu1 %v2839_v5  ;;  %v2371_v19 = vsel %vm1298_vm10, %v2366_v15, %v2368_v16 }
 0x2e3   : > { %2642 = vmatprep.subr.msk.bf16.mxu0 %vm1469_vm3, %v2370_v17  ;;  %v2382_v23 = vsel %vm1469_vm3, %v2371_v19, 0 }
 0x2e7   : > { %2639 = vmatmul.mubr.msk.bf16.vlgmr.msra.gmra.mrb[64].mxu0 %vm1510_vm14, %v2637_v21  ;;  %2785 = vmatmul.mubr.msk.bf16.vlgmr.msra.gmra.mrb[64].mxu1 %vm1510_vm14, %v2637_v21 }
 0x2e8   : > { %2385 = vmatpush1.bf16.msra.mxu0 %v2376_v22  ;;  %2789 = vmatpush3.bf16.msra.mxu1 %v2382_v23 }
 0x2e9   : > { %2416 = vmatprep.mubr.bf16.mxu0 %v2840_v6  ;;  %2790 = vmatprep.mubr.msk.bf16.mxu1 %vm2841_vm0, %v2839_v5 }
 0x2ef   : > { %2643 = vmatmul.mubr.msk.bf16.vlgmr.msra.gmra.mrb[68].mxu0 %vm1510_vm14, %v2641_v24  ;;  %2791 = vmatmul.mubr.msk.bf16.vlgmr.msra.gmra.mrb[68].mxu1 %vm1510_vm14, %v2641_v24 }
 0x382   : > { %v1557_v25 = vpop.f32.mrb[36].mxu0  ;;  %v1598_v26 = vpop.f32.mrb[36].mxu1 }
 0x383   : > { %v1559_v27 = vpop.f32.mrb[37].mxu0  ;;  %v2744_v28 = vpop.f32.mrb[37].mxu1 }
 0x384   : > { %v1561_v29 = vpop.f32.mrb[38].mxu0  ;;  %v1601_v30 = vpop.f32.mrb[38].mxu1 }
 0x385   : > { %v1562_v31 = vpop.f32.mrb[39].mxu0  ;;  %v2745_v32 = vpop.f32.mrb[39].mxu1 }
 0x38a   : > { %v1658_v6 = vpop.f32.mrb[40].mxu0  ;;  %v1699_v33 = vpop.f32.mrb[40].mxu1 }
 0x38b   : > { %v1659_v34 = vadd.f32 %v1658_v6, %v1557_v25  ;;  %v1700_v5 = vadd.f32 %v1699_v33, %v1598_v26  ;;  %v1660_v35 = vpop.f32.mrb[41].mxu0  ;;  %v2750_v36 = vpop.f32.mrb[41].mxu1 }
 0x38c   : > { %v1661_v37 = vadd.f32 %v1660_v35, %v1559_v27  ;;  %v1662_v38 = vpop.f32.mrb[42].mxu0  ;;  %v1702_v39 = vpop.f32.mrb[42].mxu1 }
 0x38d   : > { %v1663_v40 = vpop.f32.mrb[43].mxu0  ;;  %v2751_v41 = vpop.f32.mrb[43].mxu1 }
 0x392   : > { %v1764_v42 = vpop.f32.mrb[44].mxu0  ;;  %v1805_v43 = vpop.f32.mrb[44].mxu1 }
 0x393   : > { %v1811_v44 = vadd.f32 %v1764_v42, %v1659_v34  ;;  %v1813_v45 = vadd.f32 %v1805_v43, %v1700_v5  ;;  %v1766_v46 = vpop.f32.mrb[45].mxu0  ;;  %v2756_v47 = vpop.f32.mrb[45].mxu1 }
 0x394   : > { %v1812_v48 = vadd.f32 %v1766_v46, %v1661_v37  ;;  %v1768_v49 = vpop.f32.mrb[46].mxu0  ;;  %v1808_v3 = vpop.f32.mrb[46].mxu1 }
 0x395   : > { %v1769_v50 = vpop.f32.mrb[47].mxu0  ;;  %v2757_v51 = vpop.f32.mrb[47].mxu1 }
 0x39a   : > { %v1873_v52 = vpop.f32.mrb[48].mxu0  ;;  %v1914_v53 = vpop.f32.mrb[48].mxu1 }
 0x39b   : > { %v1920_v54 = vadd.f32 %v1873_v52, %v1811_v44  ;;  %v1922_v55 = vadd.f32 %v1914_v53, %v1813_v45  ;;  %v1875_v56 = vpop.f32.mrb[49].mxu0  ;;  %v2762_v57 = vpop.f32.mrb[49].mxu1 }
 0x39c   : > { %v1921_v58 = vadd.f32 %v1875_v56, %v1812_v48  ;;  %v1877_v59 = vpop.f32.mrb[50].mxu0  ;;  %v1917_v60 = vpop.f32.mrb[50].mxu1 }
 0x39d   : > { %v1878_v61 = vpop.f32.mrb[51].mxu0  ;;  %v2763_v62 = vpop.f32.mrb[51].mxu1 }
 0x39e   : > { %v2472_v44 = vpop.permute.xlu0 %2471  ;;  %v2488_v60 = vpop.permute.xlu1 %2487 }
 0x3a2   : > { %v1982_v63 = vpop.f32.mrb[52].mxu0  ;;  %v2023_v0 = vpop.f32.mrb[52].mxu1 }
 0x3a3   : > { %v2029_v1 = vadd.f32 %v1982_v63, %v1920_v54  ;;  %v2031_v2 = vadd.f32 %v2023_v0, %v1922_v55  ;;  %v1984_v4 = vpop.f32.mrb[53].mxu0  ;;  %v2768_v7 = vpop.f32.mrb[53].mxu1 }
 0x3a4   : > { %v2030_v8 = vadd.f32 %v1984_v4, %v1921_v58  ;;  %v1986_v9 = vpop.f32.mrb[54].mxu0  ;;  %v2026_v10 = vpop.f32.mrb[54].mxu1 }
 0x3a5   : > { %v1987_v11 = vpop.f32.mrb[55].mxu0  ;;  %v2769_v12 = vpop.f32.mrb[55].mxu1 }
 0x3a6   : > { %v2495_v0 = vpop.permute.xlu0 %2494 }
 0x3aa   : > { %v2091_v20 = vpop.f32.mrb[56].mxu0  ;;  %v2132_v13 = vpop.f32.mrb[56].mxu1 }
 0x3ab   : > { %v2138_v14 = vadd.f32 %v2091_v20, %v2029_v1  ;;  %v2140_v15 = vadd.f32 %v2132_v13, %v2031_v2  ;;  %v2093_v16 = vpop.f32.mrb[57].mxu0  ;;  %v2774_v17 = vpop.f32.mrb[57].mxu1 }
 0x3ac   : > { %v2139_v18 = vadd.f32 %v2093_v16, %v2030_v8  ;;  %v2095_v19 = vpop.f32.mrb[58].mxu0  ;;  %v2135_v21 = vpop.f32.mrb[58].mxu1 }
 0x3ad   : > { %v2096_v22 = vpop.f32.mrb[59].mxu0  ;;  %v2775_v23 = vpop.f32.mrb[59].mxu1 }
 0x3b2   : > { %v2200_v24 = vpop.f32.mrb[60].mxu0  ;;  %v2241_v25 = vpop.f32.mrb[60].mxu1 }
 0x3b3   : > { %v2247_v26 = vadd.f32 %v2200_v24, %v2138_v14  ;;  %v2249_v27 = vadd.f32 %v2241_v25, %v2140_v15  ;;  %v2202_v28 = vpop.f32.mrb[61].mxu0  ;;  %v2780_v29 = vpop.f32.mrb[61].mxu1 }
 0x3b4   : > { %v2248_v30 = vadd.f32 %v2202_v28, %v2139_v18  ;;  %v2204_v31 = vpop.f32.mrb[62].mxu0  ;;  %v2244_v32 = vpop.f32.mrb[62].mxu1 }
 0x3b5   : > { %v2205_v6 = vpop.f32.mrb[63].mxu0  ;;  %v2781_v33 = vpop.f32.mrb[63].mxu1 }
 0x3ba   : > { %v2309_v34 = vpop.f32.mrb[64].mxu0  ;;  %v2350_v5 = vpop.f32.mrb[64].mxu1 }
 0x3bb   : > { %v2356_v35 = vadd.f32 %v2309_v34, %v2247_v26  ;;  %v2358_v36 = vadd.f32 %v2350_v5, %v2249_v27  ;;  %v2311_v37 = vpop.f32.mrb[65].mxu0  ;;  %v2786_v38 = vpop.f32.mrb[65].mxu1 }
 0x3bc   : > { %v2357_v39 = vadd.f32 %v2311_v37, %v2248_v30  ;;  %v2313_v40 = vpop.f32.mrb[66].mxu0  ;;  %v2353_v41 = vpop.f32.mrb[66].mxu1 }
 0x3bd   : > { %v2314_v42 = vpop.f32.mrb[67].mxu0  ;;  %v2787_v43 = vpop.f32.mrb[67].mxu1 }
 0x3c2   : > { %v2418_v45 = vpop.f32.mrb[68].mxu0  ;;  %v2459_v46 = vpop.f32.mrb[68].mxu1 }
 0x3c3   : > { %v2465_v47 = vadd.f32 %v2418_v45, %v2356_v35  ;;  %v2467_v48 = vadd.f32 %v2459_v46, %v2358_v36  ;;  %v2420_v49 = vpop.f32.mrb[69].mxu0  ;;  %v2792_v3 = vpop.f32.mrb[69].mxu1 }
 0x3c4   : > { %v2466_v50 = vadd.f32 %v2420_v49, %v2357_v39  ;;  %v2422_v51 = vpop.f32.mrb[70].mxu0  ;;  %v2462_v52 = vpop.f32.mrb[70].mxu1 }
 0x3c5   : > { %v2474_v53 = vadd.f32 %v2472_v44, %v2465_v47  ;;  %v2476_v54 = vadd.f32 %v2472_v44, %v2467_v48  ;;  %v2423_v55 = vpop.f32.mrb[71].mxu0  ;;  %v2793_v56 = vpop.f32.mrb[71].mxu1 }
 0x3c6   : > { %v2475_v57 = vadd.f32 %v2472_v44, %v2466_v50 }
 0x3c7   : > { %v2480_v58 = vmul.f32 0.01, %v2474_v53  ;;  %v2482_v59 = vmul.f32 0.01, %v2476_v54  ;;  %vm2477_vm0 = vcmp.gt.f32.partialorder %v2474_v53, 0.0  ;;  %vm2479_vm1 = vcmp.gt.f32.partialorder %v2476_v54, 0.0 }
 0x3c8   : > { %v2481_v61 = vmul.f32 0.01, %v2475_v57  ;;  %vm2478_vm4 = vcmp.gt.f32.partialorder %v2475_v57, 0.0 }
 0x3c9   : > { %v2483_v62 = vsel %vm2477_vm0, %v2474_v53, %v2480_v58  ;;  %v2485_v63 = vsel %vm2479_vm1, %v2476_v54, %v2482_v59 }
 0x3ca   : > { %v2484_v1 = vsel %vm2478_vm4, %v2475_v57, %v2481_v61  ;;  %v2490_v2 = vmul.f32 %v2488_v60, %v2483_v62  ;;  %v2492_v4 = vmul.f32 %v2488_v60, %v2485_v63 }
 0x3cb   : > { %v2491_v7 = vmul.f32 %v2488_v60, %v2484_v1 }
 0x3cc   : > { %v2497_v8 = vadd.f32 %v2495_v0, %v2490_v2  ;;  %v2499_v9 = vadd.f32 %v2495_v0, %v2492_v4 }
 0x3cd   : > { %v2498_v10 = vadd.f32 %v2495_v0, %v2491_v7 }
 0x3ce   : > { %2500 = vst [vmem:[%s251_s28] sm:$0xff] %v2497_v8  ;;  %2502 = vst [vmem:[%s251_s28 + $0x10] sm:$0xff] %v2499_v9 }
 0x3cf   : > { %2501 = vst [vmem:[%s251_s28 + $0x8] sm:$0xff] %v2498_v10 }
 0x3d0 PF: > { %s16_s21 = sadd.s32 1, %s2836_s21  }
 0x3d1   : > { %p13_p4 = scmp.ge.s32.totalorder %s16_s21, 4  }
 0x3d3   :  { %15 = sbr.rel (!%p13_p4) target bundleno = 1 (0x1), region = 90 }

</bundles_post_ra>
